<compile_context>
chip_gen: v7x
topology: tpu7x:2x2x1
jax: 0.10.0
libtpu: 0.0.40
codegen_flags: <defaults>
</compile_context>

<pallas_src>
import functools
import math

import jax
import jax.numpy as jnp
from jax import lax
from jax.experimental import pallas as pl
from jax.experimental.pallas import tpu as pltpu


# ----------------------------------------------------------------------------
# In-kernel building blocks (pure jnp on VMEM-resident values)
# ----------------------------------------------------------------------------
def _temporal_block_2d(a, w1, b1, w2, b2, wd, bd, *, K, d, L):
    """One TemporalBlock on one batch element, channels-first (C, L) -> (C_out, L).

    Only the L time-steps that survive the final `out[:, -L:]` slice are
    computed for both convs (right-side zero padding only).
    """
    C_in = a.shape[0]
    C_out = w1.shape[1]
    p = (K - 1) * d

    # conv1 (only the needed window) + bias + ReLU
    ap = jnp.concatenate([a, jnp.zeros((C_in, p), jnp.float32)], axis=-1)   # (C_in, L+p)
    acc1 = jnp.zeros((C_out, L), jnp.float32)
    for j in range(K):  # static taps; im2col single-matmul is the scale-up path
        acc1 = acc1 + jnp.dot(w1[j], ap[:, j * d: j * d + L],
                              preferred_element_type=jnp.float32)
    g = jnp.maximum(acc1 + b1, 0.0)                                          # (C_out, L)

    # conv2 (only the surviving L outputs) + bias + ReLU
    gp = jnp.concatenate([g, jnp.zeros((C_out, p), jnp.float32)], axis=-1)   # (C_out, L+p)
    acc2 = jnp.zeros((C_out, L), jnp.float32)
    for j in range(K):
        acc2 = acc2 + jnp.dot(w2[j], gp[:, j * d: j * d + L],
                              preferred_element_type=jnp.float32)
    o2 = jnp.maximum(acc2 + b2, 0.0)

    # residual (identity or 1x1 conv) + add + ReLU epilogue
    if wd is None:
        res = a
    else:
        res = jnp.dot(wd, a, preferred_element_type=jnp.float32) + bd
    return jnp.maximum(o2 + res, 0.0)


def _make_fused_kernel(has_down_flags, K, B, L):
    """Build the fused whole-network kernel for a fixed block structure."""

    def kernel(*args):
        o_ref = args[-1]                  # (num_classes, B)
        in_refs = args[:-1]
        x_ref = in_refs[0]                # (B, C_in, L) in VMEM

        acts = [x_ref[b] for b in range(B)]   # list of (C, L) values, stays on-chip
        idx = 1
        for i, has_down in enumerate(has_down_flags):
            d = 2 ** i
            w1 = in_refs[idx][...]        # (K, C_out, C_in)
            b1 = in_refs[idx + 1][...]    # (C_out, 1)
            w2 = in_refs[idx + 2][...]
            b2 = in_refs[idx + 3][...]
            idx += 4
            if has_down:
                wd = in_refs[idx][...]    # (C_out, C_in)
                bd = in_refs[idx + 1][...]
                idx += 2
            else:
                wd, bd = None, None
            acts = [_temporal_block_2d(a, w1, b1, w2, b2, wd, bd, K=K, d=d, L=L)
                    for a in acts]

        # Final Linear epilogue on the last time column, whole batch in one dot.
        fc_w = in_refs[idx][...]          # (N, C_last)
        fc_b = in_refs[idx + 1][...]      # (N, 1)
        last = jnp.concatenate([a[:, L - 1: L] for a in acts], axis=-1)  # (C_last, B)
        o_ref[...] = jnp.dot(fc_w, last, preferred_element_type=jnp.float32) + fc_b

    return kernel


# ----------------------------------------------------------------------------
# Wrapper: one fused pallas_call for the whole forward
# ----------------------------------------------------------------------------
@functools.partial(jax.jit, static_argnames=("kernel_size",))
def tcn_forward(x, params, kernel_size):
    """x: (B, T, input_size) -> logits (B, num_classes)."""
    B, T, _ = x.shape
    # channels-first, same as torch's x.permute(0, 2, 1) (one tiny XLA transpose)
    xc = jnp.transpose(x, (0, 2, 1)).astype(jnp.float32)     # (B, C_in, T)

    flat, has_down = [], []
    for bp in params["blocks"]:
        flat.append(jnp.transpose(bp["conv1_w"], (2, 0, 1)))  # (K, C_out, C_in)
        flat.append(bp["conv1_b"][:, None])                   # (C_out, 1)
        flat.append(jnp.transpose(bp["conv2_w"], (2, 0, 1)))
        flat.append(bp["conv2_b"][:, None])
        hd = bp["down_w"] is not None
        has_down.append(hd)
        if hd:
            flat.append(bp["down_w"][:, :, 0])                # (C_out, C_in)
            flat.append(bp["down_b"][:, None])                # (C_out, 1)
    flat.append(params["fc_w"])                               # (N, C_last)
    flat.append(params["fc_b"][:, None])                      # (N, 1)

    N = params["fc_w"].shape[0]
    kernel = _make_fused_kernel(tuple(has_down), kernel_size, B, T)
    n_in = 1 + len(flat)

    out_nb = pl.pallas_call(
        kernel,
        out_shape=jax.ShapeDtypeStruct((N, B), jnp.float32),
        in_specs=[pl.BlockSpec(memory_space=pltpu.MemorySpace.VMEM)] * n_in,
        out_specs=pl.BlockSpec(memory_space=pltpu.MemorySpace.VMEM),
    )(xc, *flat)
    return out_nb.T                                           # (B, N)


# ----------------------------------------------------------------------------
# Pure-JAX reference mirroring the torch forward exactly (correctness check)
# ----------------------------------------------------------------------------
def _ref_conv1d(x, w, b, dilation, padding):
    out = lax.conv_general_dilated(
        x, w, window_strides=(1,), padding=[(padding, padding)],
        rhs_dilation=(dilation,), dimension_numbers=("NCH", "OIH", "NCH"))
    return out + b[None, :, None]


def ref_forward(x, params, kernel_size):
    h = jnp.transpose(x, (0, 2, 1))
    for i, bp in enumerate(params["blocks"]):
        d = 2 ** i
        p = (kernel_size - 1) * d
        out = jax.nn.relu(_ref_conv1d(h, bp["conv1_w"], bp["conv1_b"], d, p))
        out = jax.nn.relu(_ref_conv1d(out, bp["conv2_w"], bp["conv2_b"], d, p))
        res = h if bp["down_w"] is None else _ref_conv1d(
            h, bp["down_w"], bp["down_b"], 1, 0)
        h = jax.nn.relu(out[:, :, -res.shape[2]:] + res)      # keep LAST L (torch spec)
    return h[:, :, -1] @ params["fc_w"].T + params["fc_b"]


# ----------------------------------------------------------------------------
# Deterministic parameter initialization (matches module shapes, not a checkpoint)
# ----------------------------------------------------------------------------
def _kaiming_conv(key, c_out, c_in, k):
    fan_in = c_in * k
    std = math.sqrt(2.0 / fan_in)
    return std * jax.random.normal(key, (c_out, c_in, k), jnp.float32)


def _uniform_bias(key, n, fan_in):
    bound = 1.0 / math.sqrt(fan_in)
    return jax.random.uniform(key, (n,), jnp.float32, -bound, bound)


def init_params(key, input_size, num_channels, kernel_size, num_classes):
    blocks = []
    for i, c_out in enumerate(num_channels):
        c_in = input_size if i == 0 else num_channels[i - 1]
        key, k1, k2, k3, k4, k5, k6 = jax.random.split(key, 7)
        bp = {
            "conv1_w": _kaiming_conv(k1, c_out, c_in, kernel_size),
            "conv1_b": _uniform_bias(k2, c_out, c_in * kernel_size),
            "conv2_w": _kaiming_conv(k3, c_out, c_out, kernel_size),
            "conv2_b": _uniform_bias(k4, c_out, c_out * kernel_size),
        }
        if c_in != c_out:
            bp["down_w"] = _kaiming_conv(k5, c_out, c_in, 1)
            bp["down_b"] = _uniform_bias(k6, c_out, c_in)
        else:
            bp["down_w"] = None
            bp["down_b"] = None
        blocks.append(bp)

    key, kw, kb = jax.random.split(key, 3)
    c_last = num_channels[-1]
    bound = 1.0 / math.sqrt(c_last)
    fc_w = jax.random.uniform(kw, (num_classes, c_last), jnp.float32, -bound, bound)
    fc_b = jax.random.uniform(kb, (num_classes,), jnp.float32, -bound, bound)
    return {"blocks": blocks, "fc_w": fc_w, "fc_b": fc_b}


# ----------------------------------------------------------------------------
if __name__ == "__main__":
    B, T, INPUT_SIZE = 2, 16, 4
    NUM_CHANNELS = (8, 16, 16)     # exercises both downsample and identity residual
    KERNEL_SIZE = 3
    NUM_CLASSES = 2

    root = jax.random.PRNGKey(0)
    kx, kp = jax.random.split(root)
    x = jax.random.normal(kx, (B, T, INPUT_SIZE), jnp.float32)
    params = init_params(kp, INPUT_SIZE, NUM_CHANNELS, KERNEL_SIZE, NUM_CLASSES)

    out = jax.block_until_ready(tcn_forward(x, params, KERNEL_SIZE))
    ref = jax.block_until_ready(ref_forward(x, params, KERNEL_SIZE))

    assert out.shape == (B, NUM_CLASSES)
    assert jnp.allclose(out, ref, rtol=1e-4, atol=1e-4), (out, ref)
    print("KERNEL_OK")
</pallas_src>

<mosaic_0001>
module attributes {stable_mosaic.version = 11 : i64} {
  func.func @kernel(%arg0: memref<2x4x16xf32, #tpu.memory_space<vmem>>, %arg1: memref<3x8x4xf32, #tpu.memory_space<vmem>>, %arg2: memref<8x1xf32, #tpu.memory_space<vmem>>, %arg3: memref<3x8x8xf32, #tpu.memory_space<vmem>>, %arg4: memref<8x1xf32, #tpu.memory_space<vmem>>, %arg5: memref<8x4xf32, #tpu.memory_space<vmem>>, %arg6: memref<8x1xf32, #tpu.memory_space<vmem>>, %arg7: memref<3x16x8xf32, #tpu.memory_space<vmem>>, %arg8: memref<16x1xf32, #tpu.memory_space<vmem>>, %arg9: memref<3x16x16xf32, #tpu.memory_space<vmem>>, %arg10: memref<16x1xf32, #tpu.memory_space<vmem>>, %arg11: memref<16x8xf32, #tpu.memory_space<vmem>>, %arg12: memref<16x1xf32, #tpu.memory_space<vmem>>, %arg13: memref<3x16x16xf32, #tpu.memory_space<vmem>>, %arg14: memref<16x1xf32, #tpu.memory_space<vmem>>, %arg15: memref<3x16x16xf32, #tpu.memory_space<vmem>>, %arg16: memref<16x1xf32, #tpu.memory_space<vmem>>, %arg17: memref<2x16xf32, #tpu.memory_space<vmem>>, %arg18: memref<2x1xf32, #tpu.memory_space<vmem>>, %arg19: memref<2x2xf32, #tpu.memory_space<vmem>>) attributes {dimension_semantics = [], scalar_prefetch = 0 : i64, scratch_operands = 0 : i64, tpu.core_type = #tpu.core_type<tc>} {
    %c0 = arith.constant 0 : index
    %c0_0 = arith.constant 0 : index
    %c0_1 = arith.constant 0 : index
    %0 = vector.load %arg0[%c0, %c0_0, %c0_1] : memref<2x4x16xf32, #tpu.memory_space<vmem>>, vector<1x4x16xf32>
    %1 = vector.shape_cast %0 : vector<1x4x16xf32> to vector<4x16xf32>
    %c1 = arith.constant 1 : index
    %c0_2 = arith.constant 0 : index
    %c0_3 = arith.constant 0 : index
    %2 = vector.load %arg0[%c1, %c0_2, %c0_3] : memref<2x4x16xf32, #tpu.memory_space<vmem>>, vector<1x4x16xf32>
    %3 = vector.shape_cast %2 : vector<1x4x16xf32> to vector<4x16xf32>
    %c0_4 = arith.constant 0 : index
    %c0_5 = arith.constant 0 : index
    %c0_6 = arith.constant 0 : index
    %4 = vector.load %arg1[%c0_4, %c0_5, %c0_6] : memref<3x8x4xf32, #tpu.memory_space<vmem>>, vector<3x8x4xf32>
    %c0_7 = arith.constant 0 : index
    %c0_8 = arith.constant 0 : index
    %5 = vector.load %arg2[%c0_7, %c0_8] : memref<8x1xf32, #tpu.memory_space<vmem>>, vector<8x1xf32>
    %c0_9 = arith.constant 0 : index
    %c0_10 = arith.constant 0 : index
    %c0_11 = arith.constant 0 : index
    %6 = vector.load %arg3[%c0_9, %c0_10, %c0_11] : memref<3x8x8xf32, #tpu.memory_space<vmem>>, vector<3x8x8xf32>
    %c0_12 = arith.constant 0 : index
    %c0_13 = arith.constant 0 : index
    %7 = vector.load %arg4[%c0_12, %c0_13] : memref<8x1xf32, #tpu.memory_space<vmem>>, vector<8x1xf32>
    %c0_14 = arith.constant 0 : index
    %c0_15 = arith.constant 0 : index
    %8 = vector.load %arg5[%c0_14, %c0_15] : memref<8x4xf32, #tpu.memory_space<vmem>>, vector<8x4xf32>
    %c0_16 = arith.constant 0 : index
    %c0_17 = arith.constant 0 : index
    %9 = vector.load %arg6[%c0_16, %c0_17] : memref<8x1xf32, #tpu.memory_space<vmem>>, vector<8x1xf32>
    %cst = arith.constant 0.000000e+00 : f32
    %10 = vector.broadcast %cst : f32 to vector<4x2xf32>
    %11 = tpu.concatenate %1, %10 in 1 : vector<4x16xf32>, vector<4x2xf32> -> vector<4x18xf32>
    %cst_18 = arith.constant 0.000000e+00 : f32
    %12 = vector.broadcast %cst_18 : f32 to vector<8x16xf32>
    %13 = vector.extract_strided_slice %4 {offsets = [0, 0, 0], sizes = [1, 8, 4], strides = [1, 1, 1]} : vector<3x8x4xf32> to vector<1x8x4xf32>
    %14 = vector.shape_cast %13 : vector<1x8x4xf32> to vector<8x4xf32>
    %15 = vector.extract_strided_slice %11 {offsets = [0, 0], sizes = [4, 16], strides = [1, 1]} : vector<4x18xf32> to vector<4x16xf32>
    %cst_19 = arith.constant dense<0.000000e+00> : vector<8x16xf32>
    %16 = tpu.matmul %14, %15, %cst_19 {dimension_numbers = #tpu.dot_dimension_numbers<[1], [0], [0], [1], [0, 0, 1, 1], [], []>} : vector<8x4xf32>, vector<4x16xf32>, vector<8x16xf32> -> vector<8x16xf32>
    %17 = arith.addf %12, %16 : vector<8x16xf32>
    %18 = vector.extract_strided_slice %4 {offsets = [1, 0, 0], sizes = [1, 8, 4], strides = [1, 1, 1]} : vector<3x8x4xf32> to vector<1x8x4xf32>
    %19 = vector.shape_cast %18 : vector<1x8x4xf32> to vector<8x4xf32>
    %20 = vector.extract_strided_slice %11 {offsets = [0, 1], sizes = [4, 16], strides = [1, 1]} : vector<4x18xf32> to vector<4x16xf32>
    %cst_20 = arith.constant dense<0.000000e+00> : vector<8x16xf32>
    %21 = tpu.matmul %19, %20, %cst_20 {dimension_numbers = #tpu.dot_dimension_numbers<[1], [0], [0], [1], [0, 0, 1, 1], [], []>} : vector<8x4xf32>, vector<4x16xf32>, vector<8x16xf32> -> vector<8x16xf32>
    %22 = arith.addf %17, %21 : vector<8x16xf32>
    %23 = vector.extract_strided_slice %4 {offsets = [2, 0, 0], sizes = [1, 8, 4], strides = [1, 1, 1]} : vector<3x8x4xf32> to vector<1x8x4xf32>
    %24 = vector.shape_cast %23 : vector<1x8x4xf32> to vector<8x4xf32>
    %25 = vector.extract_strided_slice %11 {offsets = [0, 2], sizes = [4, 16], strides = [1, 1]} : vector<4x18xf32> to vector<4x16xf32>
    %cst_21 = arith.constant dense<0.000000e+00> : vector<8x16xf32>
    %26 = tpu.matmul %24, %25, %cst_21 {dimension_numbers = #tpu.dot_dimension_numbers<[1], [0], [0], [1], [0, 0, 1, 1], [], []>} : vector<8x4xf32>, vector<4x16xf32>, vector<8x16xf32> -> vector<8x16xf32>
    %27 = arith.addf %22, %26 : vector<8x16xf32>
    %28 = vector.broadcast %5 : vector<8x1xf32> to vector<8x16xf32>
    %29 = arith.addf %27, %28 : vector<8x16xf32>
    %cst_22 = arith.constant 0.000000e+00 : f32
    %30 = vector.broadcast %cst_22 : f32 to vector<8x16xf32>
    %31 = arith.maximumf %29, %30 : vector<8x16xf32>
    %cst_23 = arith.constant 0.000000e+00 : f32
    %32 = vector.broadcast %cst_23 : f32 to vector<8x2xf32>
    %33 = tpu.concatenate %31, %32 in 1 : vector<8x16xf32>, vector<8x2xf32> -> vector<8x18xf32>
    %cst_24 = arith.constant 0.000000e+00 : f32
    %34 = vector.broadcast %cst_24 : f32 to vector<8x16xf32>
    %35 = vector.extract_strided_slice %6 {offsets = [0, 0, 0], sizes = [1, 8, 8], strides = [1, 1, 1]} : vector<3x8x8xf32> to vector<1x8x8xf32>
    %36 = vector.shape_cast %35 : vector<1x8x8xf32> to vector<8x8xf32>
    %37 = vector.extract_strided_slice %33 {offsets = [0, 0], sizes = [8, 16], strides = [1, 1]} : vector<8x18xf32> to vector<8x16xf32>
    %cst_25 = arith.constant dense<0.000000e+00> : vector<8x16xf32>
    %38 = tpu.matmul %36, %37, %cst_25 {dimension_numbers = #tpu.dot_dimension_numbers<[1], [0], [0], [1], [0, 0, 1, 1], [], []>} : vector<8x8xf32>, vector<8x16xf32>, vector<8x16xf32> -> vector<8x16xf32>
    %39 = arith.addf %34, %38 : vector<8x16xf32>
    %40 = vector.extract_strided_slice %6 {offsets = [1, 0, 0], sizes = [1, 8, 8], strides = [1, 1, 1]} : vector<3x8x8xf32> to vector<1x8x8xf32>
    %41 = vector.shape_cast %40 : vector<1x8x8xf32> to vector<8x8xf32>
    %42 = vector.extract_strided_slice %33 {offsets = [0, 1], sizes = [8, 16], strides = [1, 1]} : vector<8x18xf32> to vector<8x16xf32>
    %cst_26 = arith.constant dense<0.000000e+00> : vector<8x16xf32>
    %43 = tpu.matmul %41, %42, %cst_26 {dimension_numbers = #tpu.dot_dimension_numbers<[1], [0], [0], [1], [0, 0, 1, 1], [], []>} : vector<8x8xf32>, vector<8x16xf32>, vector<8x16xf32> -> vector<8x16xf32>
    %44 = arith.addf %39, %43 : vector<8x16xf32>
    %45 = vector.extract_strided_slice %6 {offsets = [2, 0, 0], sizes = [1, 8, 8], strides = [1, 1, 1]} : vector<3x8x8xf32> to vector<1x8x8xf32>
    %46 = vector.shape_cast %45 : vector<1x8x8xf32> to vector<8x8xf32>
    %47 = vector.extract_strided_slice %33 {offsets = [0, 2], sizes = [8, 16], strides = [1, 1]} : vector<8x18xf32> to vector<8x16xf32>
    %cst_27 = arith.constant dense<0.000000e+00> : vector<8x16xf32>
    %48 = tpu.matmul %46, %47, %cst_27 {dimension_numbers = #tpu.dot_dimension_numbers<[1], [0], [0], [1], [0, 0, 1, 1], [], []>} : vector<8x8xf32>, vector<8x16xf32>, vector<8x16xf32> -> vector<8x16xf32>
    %49 = arith.addf %44, %48 : vector<8x16xf32>
    %50 = vector.broadcast %7 : vector<8x1xf32> to vector<8x16xf32>
    %51 = arith.addf %49, %50 : vector<8x16xf32>
    %cst_28 = arith.constant 0.000000e+00 : f32
    %52 = vector.broadcast %cst_28 : f32 to vector<8x16xf32>
    %53 = arith.maximumf %51, %52 : vector<8x16xf32>
    %cst_29 = arith.constant dense<0.000000e+00> : vector<8x16xf32>
    %54 = tpu.matmul %8, %1, %cst_29 {dimension_numbers = #tpu.dot_dimension_numbers<[1], [0], [0], [1], [0, 0, 1, 1], [], []>} : vector<8x4xf32>, vector<4x16xf32>, vector<8x16xf32> -> vector<8x16xf32>
    %55 = vector.broadcast %9 : vector<8x1xf32> to vector<8x16xf32>
    %56 = arith.addf %54, %55 : vector<8x16xf32>
    %57 = arith.addf %53, %56 : vector<8x16xf32>
    %cst_30 = arith.constant 0.000000e+00 : f32
    %58 = vector.broadcast %cst_30 : f32 to vector<8x16xf32>
    %59 = arith.maximumf %57, %58 : vector<8x16xf32>
    %cst_31 = arith.constant 0.000000e+00 : f32
    %60 = vector.broadcast %cst_31 : f32 to vector<4x2xf32>
    %61 = tpu.concatenate %3, %60 in 1 : vector<4x16xf32>, vector<4x2xf32> -> vector<4x18xf32>
    %cst_32 = arith.constant 0.000000e+00 : f32
    %62 = vector.broadcast %cst_32 : f32 to vector<8x16xf32>
    %63 = vector.extract_strided_slice %4 {offsets = [0, 0, 0], sizes = [1, 8, 4], strides = [1, 1, 1]} : vector<3x8x4xf32> to vector<1x8x4xf32>
    %64 = vector.shape_cast %63 : vector<1x8x4xf32> to vector<8x4xf32>
    %65 = vector.extract_strided_slice %61 {offsets = [0, 0], sizes = [4, 16], strides = [1, 1]} : vector<4x18xf32> to vector<4x16xf32>
    %cst_33 = arith.constant dense<0.000000e+00> : vector<8x16xf32>
    %66 = tpu.matmul %64, %65, %cst_33 {dimension_numbers = #tpu.dot_dimension_numbers<[1], [0], [0], [1], [0, 0, 1, 1], [], []>} : vector<8x4xf32>, vector<4x16xf32>, vector<8x16xf32> -> vector<8x16xf32>
    %67 = arith.addf %62, %66 : vector<8x16xf32>
    %68 = vector.extract_strided_slice %4 {offsets = [1, 0, 0], sizes = [1, 8, 4], strides = [1, 1, 1]} : vector<3x8x4xf32> to vector<1x8x4xf32>
    %69 = vector.shape_cast %68 : vector<1x8x4xf32> to vector<8x4xf32>
    %70 = vector.extract_strided_slice %61 {offsets = [0, 1], sizes = [4, 16], strides = [1, 1]} : vector<4x18xf32> to vector<4x16xf32>
    %cst_34 = arith.constant dense<0.000000e+00> : vector<8x16xf32>
    %71 = tpu.matmul %69, %70, %cst_34 {dimension_numbers = #tpu.dot_dimension_numbers<[1], [0], [0], [1], [0, 0, 1, 1], [], []>} : vector<8x4xf32>, vector<4x16xf32>, vector<8x16xf32> -> vector<8x16xf32>
    %72 = arith.addf %67, %71 : vector<8x16xf32>
    %73 = vector.extract_strided_slice %4 {offsets = [2, 0, 0], sizes = [1, 8, 4], strides = [1, 1, 1]} : vector<3x8x4xf32> to vector<1x8x4xf32>
    %74 = vector.shape_cast %73 : vector<1x8x4xf32> to vector<8x4xf32>
    %75 = vector.extract_strided_slice %61 {offsets = [0, 2], sizes = [4, 16], strides = [1, 1]} : vector<4x18xf32> to vector<4x16xf32>
    %cst_35 = arith.constant dense<0.000000e+00> : vector<8x16xf32>
    %76 = tpu.matmul %74, %75, %cst_35 {dimension_numbers = #tpu.dot_dimension_numbers<[1], [0], [0], [1], [0, 0, 1, 1], [], []>} : vector<8x4xf32>, vector<4x16xf32>, vector<8x16xf32> -> vector<8x16xf32>
    %77 = arith.addf %72, %76 : vector<8x16xf32>
    %78 = vector.broadcast %5 : vector<8x1xf32> to vector<8x16xf32>
    %79 = arith.addf %77, %78 : vector<8x16xf32>
    %cst_36 = arith.constant 0.000000e+00 : f32
    %80 = vector.broadcast %cst_36 : f32 to vector<8x16xf32>
    %81 = arith.maximumf %79, %80 : vector<8x16xf32>
    %cst_37 = arith.constant 0.000000e+00 : f32
    %82 = vector.broadcast %cst_37 : f32 to vector<8x2xf32>
    %83 = tpu.concatenate %81, %82 in 1 : vector<8x16xf32>, vector<8x2xf32> -> vector<8x18xf32>
    %cst_38 = arith.constant 0.000000e+00 : f32
    %84 = vector.broadcast %cst_38 : f32 to vector<8x16xf32>
    %85 = vector.extract_strided_slice %6 {offsets = [0, 0, 0], sizes = [1, 8, 8], strides = [1, 1, 1]} : vector<3x8x8xf32> to vector<1x8x8xf32>
    %86 = vector.shape_cast %85 : vector<1x8x8xf32> to vector<8x8xf32>
    %87 = vector.extract_strided_slice %83 {offsets = [0, 0], sizes = [8, 16], strides = [1, 1]} : vector<8x18xf32> to vector<8x16xf32>
    %cst_39 = arith.constant dense<0.000000e+00> : vector<8x16xf32>
    %88 = tpu.matmul %86, %87, %cst_39 {dimension_numbers = #tpu.dot_dimension_numbers<[1], [0], [0], [1], [0, 0, 1, 1], [], []>} : vector<8x8xf32>, vector<8x16xf32>, vector<8x16xf32> -> vector<8x16xf32>
    %89 = arith.addf %84, %88 : vector<8x16xf32>
    %90 = vector.extract_strided_slice %6 {offsets = [1, 0, 0], sizes = [1, 8, 8], strides = [1, 1, 1]} : vector<3x8x8xf32> to vector<1x8x8xf32>
    %91 = vector.shape_cast %90 : vector<1x8x8xf32> to vector<8x8xf32>
    %92 = vector.extract_strided_slice %83 {offsets = [0, 1], sizes = [8, 16], strides = [1, 1]} : vector<8x18xf32> to vector<8x16xf32>
    %cst_40 = arith.constant dense<0.000000e+00> : vector<8x16xf32>
    %93 = tpu.matmul %91, %92, %cst_40 {dimension_numbers = #tpu.dot_dimension_numbers<[1], [0], [0], [1], [0, 0, 1, 1], [], []>} : vector<8x8xf32>, vector<8x16xf32>, vector<8x16xf32> -> vector<8x16xf32>
    %94 = arith.addf %89, %93 : vector<8x16xf32>
    %95 = vector.extract_strided_slice %6 {offsets = [2, 0, 0], sizes = [1, 8, 8], strides = [1, 1, 1]} : vector<3x8x8xf32> to vector<1x8x8xf32>
    %96 = vector.shape_cast %95 : vector<1x8x8xf32> to vector<8x8xf32>
    %97 = vector.extract_strided_slice %83 {offsets = [0, 2], sizes = [8, 16], strides = [1, 1]} : vector<8x18xf32> to vector<8x16xf32>
    %cst_41 = arith.constant dense<0.000000e+00> : vector<8x16xf32>
    %98 = tpu.matmul %96, %97, %cst_41 {dimension_numbers = #tpu.dot_dimension_numbers<[1], [0], [0], [1], [0, 0, 1, 1], [], []>} : vector<8x8xf32>, vector<8x16xf32>, vector<8x16xf32> -> vector<8x16xf32>
    %99 = arith.addf %94, %98 : vector<8x16xf32>
    %100 = vector.broadcast %7 : vector<8x1xf32> to vector<8x16xf32>
    %101 = arith.addf %99, %100 : vector<8x16xf32>
    %cst_42 = arith.constant 0.000000e+00 : f32
    %102 = vector.broadcast %cst_42 : f32 to vector<8x16xf32>
    %103 = arith.maximumf %101, %102 : vector<8x16xf32>
    %cst_43 = arith.constant dense<0.000000e+00> : vector<8x16xf32>
    %104 = tpu.matmul %8, %3, %cst_43 {dimension_numbers = #tpu.dot_dimension_numbers<[1], [0], [0], [1], [0, 0, 1, 1], [], []>} : vector<8x4xf32>, vector<4x16xf32>, vector<8x16xf32> -> vector<8x16xf32>
    %105 = vector.broadcast %9 : vector<8x1xf32> to vector<8x16xf32>
    %106 = arith.addf %104, %105 : vector<8x16xf32>
    %107 = arith.addf %103, %106 : vector<8x16xf32>
    %cst_44 = arith.constant 0.000000e+00 : f32
    %108 = vector.broadcast %cst_44 : f32 to vector<8x16xf32>
    %109 = arith.maximumf %107, %108 : vector<8x16xf32>
    %c0_45 = arith.constant 0 : index
    %c0_46 = arith.constant 0 : index
    %c0_47 = arith.constant 0 : index
    %110 = vector.load %arg7[%c0_45, %c0_46, %c0_47] : memref<3x16x8xf32, #tpu.memory_space<vmem>>, vector<3x16x8xf32>
    %c0_48 = arith.constant 0 : index
    %c0_49 = arith.constant 0 : index
    %111 = vector.load %arg8[%c0_48, %c0_49] : memref<16x1xf32, #tpu.memory_space<vmem>>, vector<16x1xf32>
    %c0_50 = arith.constant 0 : index
    %c0_51 = arith.constant 0 : index
    %c0_52 = arith.constant 0 : index
    %112 = vector.load %arg9[%c0_50, %c0_51, %c0_52] : memref<3x16x16xf32, #tpu.memory_space<vmem>>, vector<3x16x16xf32>
    %c0_53 = arith.constant 0 : index
    %c0_54 = arith.constant 0 : index
    %113 = vector.load %arg10[%c0_53, %c0_54] : memref<16x1xf32, #tpu.memory_space<vmem>>, vector<16x1xf32>
    %c0_55 = arith.constant 0 : index
    %c0_56 = arith.constant 0 : index
    %114 = vector.load %arg11[%c0_55, %c0_56] : memref<16x8xf32, #tpu.memory_space<vmem>>, vector<16x8xf32>
    %c0_57 = arith.constant 0 : index
    %c0_58 = arith.constant 0 : index
    %115 = vector.load %arg12[%c0_57, %c0_58] : memref<16x1xf32, #tpu.memory_space<vmem>>, vector<16x1xf32>
    %cst_59 = arith.constant 0.000000e+00 : f32
    %116 = vector.broadcast %cst_59 : f32 to vector<8x4xf32>
    %117 = tpu.concatenate %59, %116 in 1 : vector<8x16xf32>, vector<8x4xf32> -> vector<8x20xf32>
    %cst_60 = arith.constant 0.000000e+00 : f32
    %118 = vector.broadcast %cst_60 : f32 to vector<16x16xf32>
    %119 = vector.extract_strided_slice %110 {offsets = [0, 0, 0], sizes = [1, 16, 8], strides = [1, 1, 1]} : vector<3x16x8xf32> to vector<1x16x8xf32>
    %120 = vector.shape_cast %119 : vector<1x16x8xf32> to vector<16x8xf32>
    %121 = vector.extract_strided_slice %117 {offsets = [0, 0], sizes = [8, 16], strides = [1, 1]} : vector<8x20xf32> to vector<8x16xf32>
    %cst_61 = arith.constant dense<0.000000e+00> : vector<16x16xf32>
    %122 = tpu.matmul %120, %121, %cst_61 {dimension_numbers = #tpu.dot_dimension_numbers<[1], [0], [0], [1], [0, 0, 1, 1], [], []>} : vector<16x8xf32>, vector<8x16xf32>, vector<16x16xf32> -> vector<16x16xf32>
    %123 = arith.addf %118, %122 : vector<16x16xf32>
    %124 = vector.extract_strided_slice %110 {offsets = [1, 0, 0], sizes = [1, 16, 8], strides = [1, 1, 1]} : vector<3x16x8xf32> to vector<1x16x8xf32>
    %125 = vector.shape_cast %124 : vector<1x16x8xf32> to vector<16x8xf32>
    %126 = vector.extract_strided_slice %117 {offsets = [0, 2], sizes = [8, 16], strides = [1, 1]} : vector<8x20xf32> to vector<8x16xf32>
    %cst_62 = arith.constant dense<0.000000e+00> : vector<16x16xf32>
    %127 = tpu.matmul %125, %126, %cst_62 {dimension_numbers = #tpu.dot_dimension_numbers<[1], [0], [0], [1], [0, 0, 1, 1], [], []>} : vector<16x8xf32>, vector<8x16xf32>, vector<16x16xf32> -> vector<16x16xf32>
    %128 = arith.addf %123, %127 : vector<16x16xf32>
    %129 = vector.extract_strided_slice %110 {offsets = [2, 0, 0], sizes = [1, 16, 8], strides = [1, 1, 1]} : vector<3x16x8xf32> to vector<1x16x8xf32>
    %130 = vector.shape_cast %129 : vector<1x16x8xf32> to vector<16x8xf32>
    %131 = vector.extract_strided_slice %117 {offsets = [0, 4], sizes = [8, 16], strides = [1, 1]} : vector<8x20xf32> to vector<8x16xf32>
    %cst_63 = arith.constant dense<0.000000e+00> : vector<16x16xf32>
    %132 = tpu.matmul %130, %131, %cst_63 {dimension_numbers = #tpu.dot_dimension_numbers<[1], [0], [0], [1], [0, 0, 1, 1], [], []>} : vector<16x8xf32>, vector<8x16xf32>, vector<16x16xf32> -> vector<16x16xf32>
    %133 = arith.addf %128, %132 : vector<16x16xf32>
    %134 = vector.broadcast %111 : vector<16x1xf32> to vector<16x16xf32>
    %135 = arith.addf %133, %134 : vector<16x16xf32>
    %cst_64 = arith.constant 0.000000e+00 : f32
    %136 = vector.broadcast %cst_64 : f32 to vector<16x16xf32>
    %137 = arith.maximumf %135, %136 : vector<16x16xf32>
    %cst_65 = arith.constant 0.000000e+00 : f32
    %138 = vector.broadcast %cst_65 : f32 to vector<16x4xf32>
    %139 = tpu.concatenate %137, %138 in 1 : vector<16x16xf32>, vector<16x4xf32> -> vector<16x20xf32>
    %cst_66 = arith.constant 0.000000e+00 : f32
    %140 = vector.broadcast %cst_66 : f32 to vector<16x16xf32>
    %141 = vector.extract_strided_slice %112 {offsets = [0, 0, 0], sizes = [1, 16, 16], strides = [1, 1, 1]} : vector<3x16x16xf32> to vector<1x16x16xf32>
    %142 = vector.shape_cast %141 : vector<1x16x16xf32> to vector<16x16xf32>
    %143 = vector.extract_strided_slice %139 {offsets = [0, 0], sizes = [16, 16], strides = [1, 1]} : vector<16x20xf32> to vector<16x16xf32>
    %cst_67 = arith.constant dense<0.000000e+00> : vector<16x16xf32>
    %144 = tpu.matmul %142, %143, %cst_67 {dimension_numbers = #tpu.dot_dimension_numbers<[1], [0], [0], [1], [0, 0, 1, 1], [], []>} : vector<16x16xf32>, vector<16x16xf32>, vector<16x16xf32> -> vector<16x16xf32>
    %145 = arith.addf %140, %144 : vector<16x16xf32>
    %146 = vector.extract_strided_slice %112 {offsets = [1, 0, 0], sizes = [1, 16, 16], strides = [1, 1, 1]} : vector<3x16x16xf32> to vector<1x16x16xf32>
    %147 = vector.shape_cast %146 : vector<1x16x16xf32> to vector<16x16xf32>
    %148 = vector.extract_strided_slice %139 {offsets = [0, 2], sizes = [16, 16], strides = [1, 1]} : vector<16x20xf32> to vector<16x16xf32>
    %cst_68 = arith.constant dense<0.000000e+00> : vector<16x16xf32>
    %149 = tpu.matmul %147, %148, %cst_68 {dimension_numbers = #tpu.dot_dimension_numbers<[1], [0], [0], [1], [0, 0, 1, 1], [], []>} : vector<16x16xf32>, vector<16x16xf32>, vector<16x16xf32> -> vector<16x16xf32>
    %150 = arith.addf %145, %149 : vector<16x16xf32>
    %151 = vector.extract_strided_slice %112 {offsets = [2, 0, 0], sizes = [1, 16, 16], strides = [1, 1, 1]} : vector<3x16x16xf32> to vector<1x16x16xf32>
    %152 = vector.shape_cast %151 : vector<1x16x16xf32> to vector<16x16xf32>
    %153 = vector.extract_strided_slice %139 {offsets = [0, 4], sizes = [16, 16], strides = [1, 1]} : vector<16x20xf32> to vector<16x16xf32>
    %cst_69 = arith.constant dense<0.000000e+00> : vector<16x16xf32>
    %154 = tpu.matmul %152, %153, %cst_69 {dimension_numbers = #tpu.dot_dimension_numbers<[1], [0], [0], [1], [0, 0, 1, 1], [], []>} : vector<16x16xf32>, vector<16x16xf32>, vector<16x16xf32> -> vector<16x16xf32>
    %155 = arith.addf %150, %154 : vector<16x16xf32>
    %156 = vector.broadcast %113 : vector<16x1xf32> to vector<16x16xf32>
    %157 = arith.addf %155, %156 : vector<16x16xf32>
    %cst_70 = arith.constant 0.000000e+00 : f32
    %158 = vector.broadcast %cst_70 : f32 to vector<16x16xf32>
    %159 = arith.maximumf %157, %158 : vector<16x16xf32>
    %cst_71 = arith.constant dense<0.000000e+00> : vector<16x16xf32>
    %160 = tpu.matmul %114, %59, %cst_71 {dimension_numbers = #tpu.dot_dimension_numbers<[1], [0], [0], [1], [0, 0, 1, 1], [], []>} : vector<16x8xf32>, vector<8x16xf32>, vector<16x16xf32> -> vector<16x16xf32>
    %161 = vector.broadcast %115 : vector<16x1xf32> to vector<16x16xf32>
    %162 = arith.addf %160, %161 : vector<16x16xf32>
    %163 = arith.addf %159, %162 : vector<16x16xf32>
    %cst_72 = arith.constant 0.000000e+00 : f32
    %164 = vector.broadcast %cst_72 : f32 to vector<16x16xf32>
    %165 = arith.maximumf %163, %164 : vector<16x16xf32>
    %cst_73 = arith.constant 0.000000e+00 : f32
    %166 = vector.broadcast %cst_73 : f32 to vector<8x4xf32>
    %167 = tpu.concatenate %109, %166 in 1 : vector<8x16xf32>, vector<8x4xf32> -> vector<8x20xf32>
    %cst_74 = arith.constant 0.000000e+00 : f32
    %168 = vector.broadcast %cst_74 : f32 to vector<16x16xf32>
    %169 = vector.extract_strided_slice %110 {offsets = [0, 0, 0], sizes = [1, 16, 8], strides = [1, 1, 1]} : vector<3x16x8xf32> to vector<1x16x8xf32>
    %170 = vector.shape_cast %169 : vector<1x16x8xf32> to vector<16x8xf32>
    %171 = vector.extract_strided_slice %167 {offsets = [0, 0], sizes = [8, 16], strides = [1, 1]} : vector<8x20xf32> to vector<8x16xf32>
    %cst_75 = arith.constant dense<0.000000e+00> : vector<16x16xf32>
    %172 = tpu.matmul %170, %171, %cst_75 {dimension_numbers = #tpu.dot_dimension_numbers<[1], [0], [0], [1], [0, 0, 1, 1], [], []>} : vector<16x8xf32>, vector<8x16xf32>, vector<16x16xf32> -> vector<16x16xf32>
    %173 = arith.addf %168, %172 : vector<16x16xf32>
    %174 = vector.extract_strided_slice %110 {offsets = [1, 0, 0], sizes = [1, 16, 8], strides = [1, 1, 1]} : vector<3x16x8xf32> to vector<1x16x8xf32>
    %175 = vector.shape_cast %174 : vector<1x16x8xf32> to vector<16x8xf32>
    %176 = vector.extract_strided_slice %167 {offsets = [0, 2], sizes = [8, 16], strides = [1, 1]} : vector<8x20xf32> to vector<8x16xf32>
    %cst_76 = arith.constant dense<0.000000e+00> : vector<16x16xf32>
    %177 = tpu.matmul %175, %176, %cst_76 {dimension_numbers = #tpu.dot_dimension_numbers<[1], [0], [0], [1], [0, 0, 1, 1], [], []>} : vector<16x8xf32>, vector<8x16xf32>, vector<16x16xf32> -> vector<16x16xf32>
    %178 = arith.addf %173, %177 : vector<16x16xf32>
    %179 = vector.extract_strided_slice %110 {offsets = [2, 0, 0], sizes = [1, 16, 8], strides = [1, 1, 1]} : vector<3x16x8xf32> to vector<1x16x8xf32>
    %180 = vector.shape_cast %179 : vector<1x16x8xf32> to vector<16x8xf32>
    %181 = vector.extract_strided_slice %167 {offsets = [0, 4], sizes = [8, 16], strides = [1, 1]} : vector<8x20xf32> to vector<8x16xf32>
    %cst_77 = arith.constant dense<0.000000e+00> : vector<16x16xf32>
    %182 = tpu.matmul %180, %181, %cst_77 {dimension_numbers = #tpu.dot_dimension_numbers<[1], [0], [0], [1], [0, 0, 1, 1], [], []>} : vector<16x8xf32>, vector<8x16xf32>, vector<16x16xf32> -> vector<16x16xf32>
    %183 = arith.addf %178, %182 : vector<16x16xf32>
    %184 = vector.broadcast %111 : vector<16x1xf32> to vector<16x16xf32>
    %185 = arith.addf %183, %184 : vector<16x16xf32>
    %cst_78 = arith.constant 0.000000e+00 : f32
    %186 = vector.broadcast %cst_78 : f32 to vector<16x16xf32>
    %187 = arith.maximumf %185, %186 : vector<16x16xf32>
    %cst_79 = arith.constant 0.000000e+00 : f32
    %188 = vector.broadcast %cst_79 : f32 to vector<16x4xf32>
    %189 = tpu.concatenate %187, %188 in 1 : vector<16x16xf32>, vector<16x4xf32> -> vector<16x20xf32>
    %cst_80 = arith.constant 0.000000e+00 : f32
    %190 = vector.broadcast %cst_80 : f32 to vector<16x16xf32>
    %191 = vector.extract_strided_slice %112 {offsets = [0, 0, 0], sizes = [1, 16, 16], strides = [1, 1, 1]} : vector<3x16x16xf32> to vector<1x16x16xf32>
    %192 = vector.shape_cast %191 : vector<1x16x16xf32> to vector<16x16xf32>
    %193 = vector.extract_strided_slice %189 {offsets = [0, 0], sizes = [16, 16], strides = [1, 1]} : vector<16x20xf32> to vector<16x16xf32>
    %cst_81 = arith.constant dense<0.000000e+00> : vector<16x16xf32>
    %194 = tpu.matmul %192, %193, %cst_81 {dimension_numbers = #tpu.dot_dimension_numbers<[1], [0], [0], [1], [0, 0, 1, 1], [], []>} : vector<16x16xf32>, vector<16x16xf32>, vector<16x16xf32> -> vector<16x16xf32>
    %195 = arith.addf %190, %194 : vector<16x16xf32>
    %196 = vector.extract_strided_slice %112 {offsets = [1, 0, 0], sizes = [1, 16, 16], strides = [1, 1, 1]} : vector<3x16x16xf32> to vector<1x16x16xf32>
    %197 = vector.shape_cast %196 : vector<1x16x16xf32> to vector<16x16xf32>
    %198 = vector.extract_strided_slice %189 {offsets = [0, 2], sizes = [16, 16], strides = [1, 1]} : vector<16x20xf32> to vector<16x16xf32>
    %cst_82 = arith.constant dense<0.000000e+00> : vector<16x16xf32>
    %199 = tpu.matmul %197, %198, %cst_82 {dimension_numbers = #tpu.dot_dimension_numbers<[1], [0], [0], [1], [0, 0, 1, 1], [], []>} : vector<16x16xf32>, vector<16x16xf32>, vector<16x16xf32> -> vector<16x16xf32>
    %200 = arith.addf %195, %199 : vector<16x16xf32>
    %201 = vector.extract_strided_slice %112 {offsets = [2, 0, 0], sizes = [1, 16, 16], strides = [1, 1, 1]} : vector<3x16x16xf32> to vector<1x16x16xf32>
    %202 = vector.shape_cast %201 : vector<1x16x16xf32> to vector<16x16xf32>
    %203 = vector.extract_strided_slice %189 {offsets = [0, 4], sizes = [16, 16], strides = [1, 1]} : vector<16x20xf32> to vector<16x16xf32>
    %cst_83 = arith.constant dense<0.000000e+00> : vector<16x16xf32>
    %204 = tpu.matmul %202, %203, %cst_83 {dimension_numbers = #tpu.dot_dimension_numbers<[1], [0], [0], [1], [0, 0, 1, 1], [], []>} : vector<16x16xf32>, vector<16x16xf32>, vector<16x16xf32> -> vector<16x16xf32>
    %205 = arith.addf %200, %204 : vector<16x16xf32>
    %206 = vector.broadcast %113 : vector<16x1xf32> to vector<16x16xf32>
    %207 = arith.addf %205, %206 : vector<16x16xf32>
    %cst_84 = arith.constant 0.000000e+00 : f32
    %208 = vector.broadcast %cst_84 : f32 to vector<16x16xf32>
    %209 = arith.maximumf %207, %208 : vector<16x16xf32>
    %cst_85 = arith.constant dense<0.000000e+00> : vector<16x16xf32>
    %210 = tpu.matmul %114, %109, %cst_85 {dimension_numbers = #tpu.dot_dimension_numbers<[1], [0], [0], [1], [0, 0, 1, 1], [], []>} : vector<16x8xf32>, vector<8x16xf32>, vector<16x16xf32> -> vector<16x16xf32>
    %211 = vector.broadcast %115 : vector<16x1xf32> to vector<16x16xf32>
    %212 = arith.addf %210, %211 : vector<16x16xf32>
    %213 = arith.addf %209, %212 : vector<16x16xf32>
    %cst_86 = arith.constant 0.000000e+00 : f32
    %214 = vector.broadcast %cst_86 : f32 to vector<16x16xf32>
    %215 = arith.maximumf %213, %214 : vector<16x16xf32>
    %c0_87 = arith.constant 0 : index
    %c0_88 = arith.constant 0 : index
    %c0_89 = arith.constant 0 : index
    %216 = vector.load %arg13[%c0_87, %c0_88, %c0_89] : memref<3x16x16xf32, #tpu.memory_space<vmem>>, vector<3x16x16xf32>
    %c0_90 = arith.constant 0 : index
    %c0_91 = arith.constant 0 : index
    %217 = vector.load %arg14[%c0_90, %c0_91] : memref<16x1xf32, #tpu.memory_space<vmem>>, vector<16x1xf32>
    %c0_92 = arith.constant 0 : index
    %c0_93 = arith.constant 0 : index
    %c0_94 = arith.constant 0 : index
    %218 = vector.load %arg15[%c0_92, %c0_93, %c0_94] : memref<3x16x16xf32, #tpu.memory_space<vmem>>, vector<3x16x16xf32>
    %c0_95 = arith.constant 0 : index
    %c0_96 = arith.constant 0 : index
    %219 = vector.load %arg16[%c0_95, %c0_96] : memref<16x1xf32, #tpu.memory_space<vmem>>, vector<16x1xf32>
    %cst_97 = arith.constant 0.000000e+00 : f32
    %220 = vector.broadcast %cst_97 : f32 to vector<16x8xf32>
    %221 = tpu.concatenate %165, %220 in 1 : vector<16x16xf32>, vector<16x8xf32> -> vector<16x24xf32>
    %cst_98 = arith.constant 0.000000e+00 : f32
    %222 = vector.broadcast %cst_98 : f32 to vector<16x16xf32>
    %223 = vector.extract_strided_slice %216 {offsets = [0, 0, 0], sizes = [1, 16, 16], strides = [1, 1, 1]} : vector<3x16x16xf32> to vector<1x16x16xf32>
    %224 = vector.shape_cast %223 : vector<1x16x16xf32> to vector<16x16xf32>
    %225 = vector.extract_strided_slice %221 {offsets = [0, 0], sizes = [16, 16], strides = [1, 1]} : vector<16x24xf32> to vector<16x16xf32>
    %cst_99 = arith.constant dense<0.000000e+00> : vector<16x16xf32>
    %226 = tpu.matmul %224, %225, %cst_99 {dimension_numbers = #tpu.dot_dimension_numbers<[1], [0], [0], [1], [0, 0, 1, 1], [], []>} : vector<16x16xf32>, vector<16x16xf32>, vector<16x16xf32> -> vector<16x16xf32>
    %227 = arith.addf %222, %226 : vector<16x16xf32>
    %228 = vector.extract_strided_slice %216 {offsets = [1, 0, 0], sizes = [1, 16, 16], strides = [1, 1, 1]} : vector<3x16x16xf32> to vector<1x16x16xf32>
    %229 = vector.shape_cast %228 : vector<1x16x16xf32> to vector<16x16xf32>
    %230 = vector.extract_strided_slice %221 {offsets = [0, 4], sizes = [16, 16], strides = [1, 1]} : vector<16x24xf32> to vector<16x16xf32>
    %cst_100 = arith.constant dense<0.000000e+00> : vector<16x16xf32>
    %231 = tpu.matmul %229, %230, %cst_100 {dimension_numbers = #tpu.dot_dimension_numbers<[1], [0], [0], [1], [0, 0, 1, 1], [], []>} : vector<16x16xf32>, vector<16x16xf32>, vector<16x16xf32> -> vector<16x16xf32>
    %232 = arith.addf %227, %231 : vector<16x16xf32>
    %233 = vector.extract_strided_slice %216 {offsets = [2, 0, 0], sizes = [1, 16, 16], strides = [1, 1, 1]} : vector<3x16x16xf32> to vector<1x16x16xf32>
    %234 = vector.shape_cast %233 : vector<1x16x16xf32> to vector<16x16xf32>
    %235 = vector.extract_strided_slice %221 {offsets = [0, 8], sizes = [16, 16], strides = [1, 1]} : vector<16x24xf32> to vector<16x16xf32>
    %cst_101 = arith.constant dense<0.000000e+00> : vector<16x16xf32>
    %236 = tpu.matmul %234, %235, %cst_101 {dimension_numbers = #tpu.dot_dimension_numbers<[1], [0], [0], [1], [0, 0, 1, 1], [], []>} : vector<16x16xf32>, vector<16x16xf32>, vector<16x16xf32> -> vector<16x16xf32>
    %237 = arith.addf %232, %236 : vector<16x16xf32>
    %238 = vector.broadcast %217 : vector<16x1xf32> to vector<16x16xf32>
    %239 = arith.addf %237, %238 : vector<16x16xf32>
    %cst_102 = arith.constant 0.000000e+00 : f32
    %240 = vector.broadcast %cst_102 : f32 to vector<16x16xf32>
    %241 = arith.maximumf %239, %240 : vector<16x16xf32>
    %cst_103 = arith.constant 0.000000e+00 : f32
    %242 = vector.broadcast %cst_103 : f32 to vector<16x8xf32>
    %243 = tpu.concatenate %241, %242 in 1 : vector<16x16xf32>, vector<16x8xf32> -> vector<16x24xf32>
    %cst_104 = arith.constant 0.000000e+00 : f32
    %244 = vector.broadcast %cst_104 : f32 to vector<16x16xf32>
    %245 = vector.extract_strided_slice %218 {offsets = [0, 0, 0], sizes = [1, 16, 16], strides = [1, 1, 1]} : vector<3x16x16xf32> to vector<1x16x16xf32>
    %246 = vector.shape_cast %245 : vector<1x16x16xf32> to vector<16x16xf32>
    %247 = vector.extract_strided_slice %243 {offsets = [0, 0], sizes = [16, 16], strides = [1, 1]} : vector<16x24xf32> to vector<16x16xf32>
    %cst_105 = arith.constant dense<0.000000e+00> : vector<16x16xf32>
    %248 = tpu.matmul %246, %247, %cst_105 {dimension_numbers = #tpu.dot_dimension_numbers<[1], [0], [0], [1], [0, 0, 1, 1], [], []>} : vector<16x16xf32>, vector<16x16xf32>, vector<16x16xf32> -> vector<16x16xf32>
    %249 = arith.addf %244, %248 : vector<16x16xf32>
    %250 = vector.extract_strided_slice %218 {offsets = [1, 0, 0], sizes = [1, 16, 16], strides = [1, 1, 1]} : vector<3x16x16xf32> to vector<1x16x16xf32>
    %251 = vector.shape_cast %250 : vector<1x16x16xf32> to vector<16x16xf32>
    %252 = vector.extract_strided_slice %243 {offsets = [0, 4], sizes = [16, 16], strides = [1, 1]} : vector<16x24xf32> to vector<16x16xf32>
    %cst_106 = arith.constant dense<0.000000e+00> : vector<16x16xf32>
    %253 = tpu.matmul %251, %252, %cst_106 {dimension_numbers = #tpu.dot_dimension_numbers<[1], [0], [0], [1], [0, 0, 1, 1], [], []>} : vector<16x16xf32>, vector<16x16xf32>, vector<16x16xf32> -> vector<16x16xf32>
    %254 = arith.addf %249, %253 : vector<16x16xf32>
    %255 = vector.extract_strided_slice %218 {offsets = [2, 0, 0], sizes = [1, 16, 16], strides = [1, 1, 1]} : vector<3x16x16xf32> to vector<1x16x16xf32>
    %256 = vector.shape_cast %255 : vector<1x16x16xf32> to vector<16x16xf32>
    %257 = vector.extract_strided_slice %243 {offsets = [0, 8], sizes = [16, 16], strides = [1, 1]} : vector<16x24xf32> to vector<16x16xf32>
    %cst_107 = arith.constant dense<0.000000e+00> : vector<16x16xf32>
    %258 = tpu.matmul %256, %257, %cst_107 {dimension_numbers = #tpu.dot_dimension_numbers<[1], [0], [0], [1], [0, 0, 1, 1], [], []>} : vector<16x16xf32>, vector<16x16xf32>, vector<16x16xf32> -> vector<16x16xf32>
    %259 = arith.addf %254, %258 : vector<16x16xf32>
    %260 = vector.broadcast %219 : vector<16x1xf32> to vector<16x16xf32>
    %261 = arith.addf %259, %260 : vector<16x16xf32>
    %cst_108 = arith.constant 0.000000e+00 : f32
    %262 = vector.broadcast %cst_108 : f32 to vector<16x16xf32>
    %263 = arith.maximumf %261, %262 : vector<16x16xf32>
    %264 = arith.addf %263, %165 : vector<16x16xf32>
    %cst_109 = arith.constant 0.000000e+00 : f32
    %265 = vector.broadcast %cst_109 : f32 to vector<16x16xf32>
    %266 = arith.maximumf %264, %265 : vector<16x16xf32>
    %cst_110 = arith.constant 0.000000e+00 : f32
    %267 = vector.broadcast %cst_110 : f32 to vector<16x8xf32>
    %268 = tpu.concatenate %215, %267 in 1 : vector<16x16xf32>, vector<16x8xf32> -> vector<16x24xf32>
    %cst_111 = arith.constant 0.000000e+00 : f32
    %269 = vector.broadcast %cst_111 : f32 to vector<16x16xf32>
    %270 = vector.extract_strided_slice %216 {offsets = [0, 0, 0], sizes = [1, 16, 16], strides = [1, 1, 1]} : vector<3x16x16xf32> to vector<1x16x16xf32>
    %271 = vector.shape_cast %270 : vector<1x16x16xf32> to vector<16x16xf32>
    %272 = vector.extract_strided_slice %268 {offsets = [0, 0], sizes = [16, 16], strides = [1, 1]} : vector<16x24xf32> to vector<16x16xf32>
    %cst_112 = arith.constant dense<0.000000e+00> : vector<16x16xf32>
    %273 = tpu.matmul %271, %272, %cst_112 {dimension_numbers = #tpu.dot_dimension_numbers<[1], [0], [0], [1], [0, 0, 1, 1], [], []>} : vector<16x16xf32>, vector<16x16xf32>, vector<16x16xf32> -> vector<16x16xf32>
    %274 = arith.addf %269, %273 : vector<16x16xf32>
    %275 = vector.extract_strided_slice %216 {offsets = [1, 0, 0], sizes = [1, 16, 16], strides = [1, 1, 1]} : vector<3x16x16xf32> to vector<1x16x16xf32>
    %276 = vector.shape_cast %275 : vector<1x16x16xf32> to vector<16x16xf32>
    %277 = vector.extract_strided_slice %268 {offsets = [0, 4], sizes = [16, 16], strides = [1, 1]} : vector<16x24xf32> to vector<16x16xf32>
    %cst_113 = arith.constant dense<0.000000e+00> : vector<16x16xf32>
    %278 = tpu.matmul %276, %277, %cst_113 {dimension_numbers = #tpu.dot_dimension_numbers<[1], [0], [0], [1], [0, 0, 1, 1], [], []>} : vector<16x16xf32>, vector<16x16xf32>, vector<16x16xf32> -> vector<16x16xf32>
    %279 = arith.addf %274, %278 : vector<16x16xf32>
    %280 = vector.extract_strided_slice %216 {offsets = [2, 0, 0], sizes = [1, 16, 16], strides = [1, 1, 1]} : vector<3x16x16xf32> to vector<1x16x16xf32>
    %281 = vector.shape_cast %280 : vector<1x16x16xf32> to vector<16x16xf32>
    %282 = vector.extract_strided_slice %268 {offsets = [0, 8], sizes = [16, 16], strides = [1, 1]} : vector<16x24xf32> to vector<16x16xf32>
    %cst_114 = arith.constant dense<0.000000e+00> : vector<16x16xf32>
    %283 = tpu.matmul %281, %282, %cst_114 {dimension_numbers = #tpu.dot_dimension_numbers<[1], [0], [0], [1], [0, 0, 1, 1], [], []>} : vector<16x16xf32>, vector<16x16xf32>, vector<16x16xf32> -> vector<16x16xf32>
    %284 = arith.addf %279, %283 : vector<16x16xf32>
    %285 = vector.broadcast %217 : vector<16x1xf32> to vector<16x16xf32>
    %286 = arith.addf %284, %285 : vector<16x16xf32>
    %cst_115 = arith.constant 0.000000e+00 : f32
    %287 = vector.broadcast %cst_115 : f32 to vector<16x16xf32>
    %288 = arith.maximumf %286, %287 : vector<16x16xf32>
    %cst_116 = arith.constant 0.000000e+00 : f32
    %289 = vector.broadcast %cst_116 : f32 to vector<16x8xf32>
    %290 = tpu.concatenate %288, %289 in 1 : vector<16x16xf32>, vector<16x8xf32> -> vector<16x24xf32>
    %cst_117 = arith.constant 0.000000e+00 : f32
    %291 = vector.broadcast %cst_117 : f32 to vector<16x16xf32>
    %292 = vector.extract_strided_slice %218 {offsets = [0, 0, 0], sizes = [1, 16, 16], strides = [1, 1, 1]} : vector<3x16x16xf32> to vector<1x16x16xf32>
    %293 = vector.shape_cast %292 : vector<1x16x16xf32> to vector<16x16xf32>
    %294 = vector.extract_strided_slice %290 {offsets = [0, 0], sizes = [16, 16], strides = [1, 1]} : vector<16x24xf32> to vector<16x16xf32>
    %cst_118 = arith.constant dense<0.000000e+00> : vector<16x16xf32>
    %295 = tpu.matmul %293, %294, %cst_118 {dimension_numbers = #tpu.dot_dimension_numbers<[1], [0], [0], [1], [0, 0, 1, 1], [], []>} : vector<16x16xf32>, vector<16x16xf32>, vector<16x16xf32> -> vector<16x16xf32>
    %296 = arith.addf %291, %295 : vector<16x16xf32>
    %297 = vector.extract_strided_slice %218 {offsets = [1, 0, 0], sizes = [1, 16, 16], strides = [1, 1, 1]} : vector<3x16x16xf32> to vector<1x16x16xf32>
    %298 = vector.shape_cast %297 : vector<1x16x16xf32> to vector<16x16xf32>
    %299 = vector.extract_strided_slice %290 {offsets = [0, 4], sizes = [16, 16], strides = [1, 1]} : vector<16x24xf32> to vector<16x16xf32>
    %cst_119 = arith.constant dense<0.000000e+00> : vector<16x16xf32>
    %300 = tpu.matmul %298, %299, %cst_119 {dimension_numbers = #tpu.dot_dimension_numbers<[1], [0], [0], [1], [0, 0, 1, 1], [], []>} : vector<16x16xf32>, vector<16x16xf32>, vector<16x16xf32> -> vector<16x16xf32>
    %301 = arith.addf %296, %300 : vector<16x16xf32>
    %302 = vector.extract_strided_slice %218 {offsets = [2, 0, 0], sizes = [1, 16, 16], strides = [1, 1, 1]} : vector<3x16x16xf32> to vector<1x16x16xf32>
    %303 = vector.shape_cast %302 : vector<1x16x16xf32> to vector<16x16xf32>
    %304 = vector.extract_strided_slice %290 {offsets = [0, 8], sizes = [16, 16], strides = [1, 1]} : vector<16x24xf32> to vector<16x16xf32>
    %cst_120 = arith.constant dense<0.000000e+00> : vector<16x16xf32>
    %305 = tpu.matmul %303, %304, %cst_120 {dimension_numbers = #tpu.dot_dimension_numbers<[1], [0], [0], [1], [0, 0, 1, 1], [], []>} : vector<16x16xf32>, vector<16x16xf32>, vector<16x16xf32> -> vector<16x16xf32>
    %306 = arith.addf %301, %305 : vector<16x16xf32>
    %307 = vector.broadcast %219 : vector<16x1xf32> to vector<16x16xf32>
    %308 = arith.addf %306, %307 : vector<16x16xf32>
    %cst_121 = arith.constant 0.000000e+00 : f32
    %309 = vector.broadcast %cst_121 : f32 to vector<16x16xf32>
    %310 = arith.maximumf %308, %309 : vector<16x16xf32>
    %311 = arith.addf %310, %215 : vector<16x16xf32>
    %cst_122 = arith.constant 0.000000e+00 : f32
    %312 = vector.broadcast %cst_122 : f32 to vector<16x16xf32>
    %313 = arith.maximumf %311, %312 : vector<16x16xf32>
    %c0_123 = arith.constant 0 : index
    %c0_124 = arith.constant 0 : index
    %314 = vector.load %arg17[%c0_123, %c0_124] : memref<2x16xf32, #tpu.memory_space<vmem>>, vector<2x16xf32>
    %c0_125 = arith.constant 0 : index
    %c0_126 = arith.constant 0 : index
    %315 = vector.load %arg18[%c0_125, %c0_126] : memref<2x1xf32, #tpu.memory_space<vmem>>, vector<2x1xf32>
    %316 = vector.extract_strided_slice %266 {offsets = [0, 15], sizes = [16, 1], strides = [1, 1]} : vector<16x16xf32> to vector<16x1xf32>
    %317 = vector.extract_strided_slice %313 {offsets = [0, 15], sizes = [16, 1], strides = [1, 1]} : vector<16x16xf32> to vector<16x1xf32>
    %318 = tpu.concatenate %316, %317 in 1 : vector<16x1xf32>, vector<16x1xf32> -> vector<16x2xf32>
    %cst_127 = arith.constant dense<0.000000e+00> : vector<2x2xf32>
    %319 = tpu.matmul %314, %318, %cst_127 {dimension_numbers = #tpu.dot_dimension_numbers<[1], [0], [0], [1], [0, 0, 1, 1], [], []>} : vector<2x16xf32>, vector<16x2xf32>, vector<2x2xf32> -> vector<2x2xf32>
    %320 = vector.broadcast %315 : vector<2x1xf32> to vector<2x2xf32>
    %321 = arith.addf %319, %320 : vector<2x2xf32>
    %c0_128 = arith.constant 0 : index
    %c0_129 = arith.constant 0 : index
    %322 = vector.load %arg19[%c0_128, %c0_129] : memref<2x2xf32, #tpu.memory_space<vmem>>, vector<2x2xf32>
    tpu.vector_store %arg19[%c0_128, %c0_129], %321 {strides = array<i32>} : memref<2x2xf32, #tpu.memory_space<vmem>>, vector<2x2xf32>,
    return
  }
}

</mosaic_0001>

<bundles_post_ra>
// kernel: tcn_forward.1
= control target key start
LH: loop header
LB: loop body
LE: loop exit
PB: predicated region body
PF: predicated region fallthrough
CT: control target
= control target key end

     0   :  { %vm75_vm0 = vcmask 130048   ;;  %vm84_vm1 = vcmask 1043456   ;;  %v4215_v1 = vmov 0.0   ;;  %vm80_vm2 = vcmask 31744   ;;  %s4217_s25 = smov 127   ;;  %s4220_s30 = smov 124   ;;  %s4797_s0 = inlined_call_operand.vmem [shape: f32[2,4,16], index: 0, kind: input, shape index: {}]   ;;  %s4798_s1 = inlined_call_operand.vmem [shape: f32[3,8,4], index: 1, kind: input, shape index: {}]   ;;  %s4799_s2 = inlined_call_operand.vmem [shape: f32[8,1], index: 2, kind: input, shape index: {}]   ;;  %s4800_s3 = inlined_call_operand.vmem [shape: f32[3,8,8], index: 3, kind: input, shape index: {}]   ;;  %s4801_s5 = inlined_call_operand.vmem [shape: f32[8,4], index: 5, kind: input, shape index: {}]   ;;  %s4802_s4 = inlined_call_operand.vmem [shape: f32[8,1], index: 4, kind: input, shape index: {}]   ;;  %s4803_s6 = inlined_call_operand.vmem [shape: f32[8,1], index: 6, kind: input, shape index: {}]   ;;  %s4804_s8 = inlined_call_operand.vmem [shape: f32[16,1], index: 8, kind: input, shape index: {}]   ;;  %s4805_s7 = inlined_call_operand.vmem [shape: f32[3,16,8], index: 7, kind: input, shape index: {}]   ;;  %s4806_s9 = inlined_call_operand.vmem [shape: f32[3,16,16], index: 9, kind: input, shape index: {}]   ;;  %s4807_s11 = inlined_call_operand.vmem [shape: f32[16,8], index: 11, kind: input, shape index: {}]   ;;  %s4808_s10 = inlined_call_operand.vmem [shape: f32[16,1], index: 10, kind: input, shape index: {}]   ;;  %s4809_s12 = inlined_call_operand.vmem [shape: f32[16,1], index: 12, kind: input, shape index: {}]   ;;  %s4810_s13 = inlined_call_operand.vmem [shape: f32[3,16,16], index: 13, kind: input, shape index: {}]   ;;  %s4811_s14 = inlined_call_operand.vmem [shape: f32[16,1], index: 14, kind: input, shape index: {}]   ;;  %s4812_s15 = inlined_call_operand.vmem [shape: f32[3,16,16], index: 15, kind: input, shape index: {}]   ;;  %s4813_s16 = inlined_call_operand.vmem [shape: f32[16,1], index: 16, kind: input, shape index: {}]   ;;  %s4814_s18 = inlined_call_operand.vmem [shape: f32[2,1], index: 18, kind: input, shape index: {}]   ;;  %s4815_s17 = inlined_call_operand.vmem [shape: f32[2,16], index: 17, kind: input, shape index: {}]   ;;  %s4816_s19 = inlined_call_operand.vmem [shape: f32[2,2], index: 19, kind: output, shape index: {}]  }
   0x1   :  { %4820 = sst [smem:[#allocation2_spill]] %s4797_s0  ;;  %3771 = vmatprep.subr.mxu0 %v4215_v1  ;;  %3776 = vmatprep.subr.mxu1 %v4215_v1  ;;  %vm4216_vm3 = vmmov 0   ;;  %v4218_v5 = vmov 0   ;;  %vm322_vm4 = vcmask 64512   ;;  %v4401_v25 = vld [vmem:[%s4801_s5] sm:$0xff]  ;;  %vm4564_vm5 = vmpackc.low %vm75_vm0, %vm75_vm0  ;;  %vm3465_vm6 = vcmask 7168  }
   0x2   :  { %4821 = sst [smem:[#allocation3_spill]] %s4798_s1  ;;  %s4824_s20 = sld [smem:[#allocation2_spill]]  ;;  %3773 = vmatprep.mubr.msk.f32.mxu0 %vm4216_vm3, %v4215_v1  ;;  %3778 = vmatprep.mubr.msk.f32.mxu1 %vm4216_vm3, %v4215_v1  ;;  %v72_v26 = vld [vmem:[%s4802_s4] sm:$0xff]  ;;  %vm3546_vm7 = vcmask 9216  }
   0x3   :  { %4822 = sst [smem:[#allocation4_spill]] %s4799_s2  ;;  %s4825_s22 = sld [smem:[#allocation3_spill]]  ;;  %4143 = vset.pattern.permute.xlu1 %v4218_v5  ;;  %4144 = vset.pattern.permute.xlu0 %v4218_v5  ;;  %v74_v27 = vld [vmem:[%s4803_s6] sm:$0xff] }
   0x4   :  { %4823 = sst [smem:[#allocation5_spill]] %s4800_s3  ;;  %s4826_s24 = sld [smem:[#allocation4_spill]]  ;;  %v1163_v62 = vld [vmem:[%s4804_s8] sm:$0xff] }
   0x5   :  { %s4219_s3 = smov 126  }
   0x8   :  { %v62_v0 = vld [vmem:[%s4824_s20] sm:$0xf]  ;;  %v4379_v21 = vld [vmem:[%s4824_s20 + $0x4] sm:$0xf] }
   0x9   :  { %v4333_v2 = vld [vmem:[%s4825_s22] sm:$0xff]  ;;  %v76_v3 = vsel %vm75_vm0, %v62_v0, 0.0  ;;  %v4354_v6 = vld [vmem:[%s4825_s22 + $0x8] sm:$0xff]  ;;  %v4365_v8 = vld [vmem:[%s4825_s22 + $0x10] sm:$0xff]  ;;  %s4827_s22 = sld [smem:[#allocation5_spill]]  ;;  %v636_v24 = vsel %vm75_vm0, %v4379_v21, 0.0 }
   0xa   :  { %v68_v4 = vld [vmem:[%s4826_s24] sm:$0xff]  ;;  %78 = vrot.lane.b32.xlu0 %v76_v3, %s4217_s25  ;;  %3777 = vmatpush3.msk.msra.mxu1 %vm84_vm1, %v76_v3 }
   0xb   :  { %3779 = vmatmul.mubr.msk.f32.vlgmr.msra.gmra.mrb[0].mxu1 %vm80_vm2, %v4333_v2  ;;  %312 = vperm.xlu1 %4143, %v68_v4   ;;  %v4491_v4 = vld [vmem:[%s4805_s7 + $0x10] sm:$0xff] }
   0xc   :  { %3786 = vmatprep.subr.mxu1 %v4215_v1  ;;  %3788 = vmatprep.mubr.msk.f32.mxu1 %vm4216_vm3, %v4215_v1 }
   0xe   :  { %232 = vrot.lane.b32.xlu0 %v76_v3, %s4219_s3 }
   0xf   :  { %v4384_v22 = vld [vmem:[%s4827_s22] sm:$0xff]  ;;  %v4425_v28 = vld [vmem:[%s4827_s22 + $0x8] sm:$0xff]  ;;  %v4435_v31 = vld [vmem:[%s4827_s22 + $0x10] sm:$0xff] }
  0x7c   :  { %v79_v7 = vpop.permute.xlu0 %78 }
  0x7d   :  { %3772 = vmatpush3.msk.msra.mxu0 %vm84_vm1, %v79_v7  ;;  %v4506_v7 = vld [vmem:[%s4805_s7] sm:$0xff] }
  0x7e   :  { %3774 = vmatmul.mubr.msk.f32.vlgmr.msra.gmra.mrb[0].mxu0 %vm80_vm2, %v4354_v6  ;;  %3781 = vmatprep.subr.mxu0 %v4215_v1 }
  0x7f   :  { %3783 = vmatprep.mubr.msk.f32.mxu0 %vm4216_vm3, %v4215_v1 }
  0x80   :  { %v233_v9 = vpop.permute.xlu0 %232 }
  0x81   :  { %3782 = vmatpush3.msk.msra.mxu0 %vm84_vm1, %v233_v9  ;;  %v4516_v9 = vld [vmem:[%s4805_s7 + $0x8] sm:$0xff] }
  0x82   :  { %3784 = vmatmul.mubr.msk.f32.vlgmr.msra.gmra.mrb[2].mxu0 %vm80_vm2, %v4365_v8  ;;  %3791 = vmatprep.subr.mxu0 %v4215_v1 }
  0x83   :  { %3793 = vmatprep.mubr.msk.f32.mxu0 %vm4216_vm3, %v4215_v1 }
  0x8a   :  { %v4373_v16 = vpop.permute.xlu1 %312 }
  0xde   :  { %v228_v10 = vpop.f32.mrb[0].mxu1 }
  0xdf   :  { %v3780_v11 = vpop.f32.mrb[1].mxu1 }
  0xe0   :  { %v4530_v11 = vld [vmem:[%s4805_s7 + $0x28] sm:$0xff] }
 0x151   :  { %v153_v12 = vpop.f32.mrb[0].mxu0 }
 0x152   :  { %v229_v13 = vadd.f32 %v228_v10, %v153_v12  ;;  %v3775_v14 = vpop.f32.mrb[1].mxu0  ;;  %v4521_v10 = vld [vmem:[%s4805_s7 + $0x20] sm:$0xff] }
 0x155   :  { %v305_v15 = vpop.f32.mrb[2].mxu0 }
 0x156   :  { %v309_v17 = vadd.f32 %v305_v15, %v229_v13  ;;  %v3785_v18 = vpop.f32.mrb[3].mxu0 }
 0x158   :  { %v315_v19 = vadd.f32 %v4373_v16, %v309_v17 }
 0x15a   :  { %v316_v20 = vmax.f32 %v315_v19, 0.0 }
 0x15c   :  { %3792 = vmatpush3.msk.msra.mxu0 %vm75_vm0, %v316_v20  ;;  %v317_v23 = vsel %vm75_vm0, %v316_v20, 0.0 }
 0x15d   :  { %469 = vrot.lane.b32.xlu0 %v317_v23, %s4219_s3  ;;  %319 = vrot.lane.b32.xlu1 %v317_v23, %s4217_s25 }
 0x15e   :  { %3794 = vmatmul.mubr.msk.f32.vlgmr.msra.gmra.mrb[4].mxu0 %vm322_vm4, %v4384_v22  ;;  %3801 = vmatprep.subr.mxu0 %v4215_v1 }
 0x15f   :  { %3802 = vmatpush3.msk.msra.mxu0 %vm84_vm1, %v62_v0  ;;  %3803 = vmatprep.mubr.msk.f32.mxu0 %vm4216_vm3, %v4215_v1  ;;  %v1164_v0 = vld [vmem:[%s4804_s8 + $0x8] sm:$0xff]  ;;  %s4224_s8 = smov 114  }
 0x160   :  { %3811 = vmatprep.subr.mxu0 %v4215_v1 }
 0x161   :  { %638 = vrot.lane.b32.xlu1 %v636_v24, %s4217_s25  ;;  %784 = vrot.lane.b32.xlu0 %v636_v24, %s4219_s3 }
 0x162   :  { %3804 = vmatmul.mubr.msk.f32.vlgmr.msra.gmra.mrb[6].mxu0 %vm80_vm2, %v4401_v25 }
 0x163   :  { %3812 = vmatpush3.msk.msra.mxu0 %vm84_vm1, %v636_v24  ;;  %3813 = vmatprep.mubr.msk.f32.mxu0 %vm4216_vm3, %v4215_v1 }
 0x164   :  { %3821 = vmatprep.subr.mxu0 %v4215_v1 }
 0x165   :  { %548 = vperm.xlu1 %4143, %v72_v26   ;;  %555 = vperm.xlu0 %4144, %v74_v27  }
 0x166   :  { %3814 = vmatmul.mubr.msk.f32.vlgmr.msra.gmra.mrb[8].mxu0 %vm80_vm2, %v4333_v2 }
 0x167   :  { %3823 = vmatprep.mubr.msk.f32.mxu0 %vm4216_vm3, %v4215_v1 }
 0x1cf   :  { %v320_v29 = vpop.permute.xlu1 %319  ;;  %v470_v30 = vpop.permute.xlu0 %469 }
 0x1d0   :  { %3787 = vmatpush3.msra.mxu1 %v320_v29 }
 0x1d1   :  { %3789 = vmatmul.mubr.msk.f32.vlgmr.msra.gmra.mrb[2].mxu1 %vm322_vm4, %v4425_v28  ;;  %3796 = vmatprep.subr.mxu1 %v4215_v1 }
 0x1d2   :  { %3797 = vmatpush3.msra.mxu1 %v470_v30  ;;  %3798 = vmatprep.mubr.msk.f32.mxu1 %vm4216_vm3, %v4215_v1 }
 0x1d3   :  { %3806 = vmatprep.subr.mxu1 %v4215_v1  ;;  %v639_v32 = vpop.permute.xlu1 %638  ;;  %v785_v33 = vpop.permute.xlu0 %784 }
 0x1d5   :  { %3799 = vmatmul.mubr.msk.f32.vlgmr.msra.gmra.mrb[4].mxu1 %vm322_vm4, %v4435_v31 }
 0x1d6   :  { %3807 = vmatpush3.msk.msra.mxu1 %vm84_vm1, %v639_v32  ;;  %3808 = vmatprep.mubr.msk.f32.mxu1 %vm4216_vm3, %v4215_v1 }
 0x1d7   :  { %3816 = vmatprep.subr.mxu1 %v4215_v1 }
 0x1d9   :  { %3809 = vmatmul.mubr.msk.f32.vlgmr.msra.gmra.mrb[6].mxu1 %vm80_vm2, %v4354_v6  ;;  %v4500_v6 = vld [vmem:[%s4805_s7 + $0x18] sm:$0xff] }
 0x1da   :  { %3817 = vmatpush3.msk.msra.mxu1 %vm84_vm1, %v785_v33  ;;  %3818 = vmatprep.mubr.msk.f32.mxu1 %vm4216_vm3, %v4215_v1  ;;  %v1167_v33 = vld [vmem:[%s4806_s9 + $0x10] sm:$0xff] }
 0x1db   :  { %3826 = vmatprep.subr.mxu1 %v4215_v1 }
 0x1dd   :  { %3819 = vmatmul.mubr.msk.f32.vlgmr.msra.gmra.mrb[8].mxu1 %vm80_vm2, %v4365_v8 }
 0x1de   :  { %3828 = vmatprep.mubr.msk.f32.mxu1 %vm4216_vm3, %v4215_v1 }
 0x1e4   :  { %v4454_v46 = vpop.permute.xlu1 %548  ;;  %v4456_v47 = vpop.permute.xlu0 %555 }
 0x231   :  { %v465_v34 = vpop.f32.mrb[4].mxu0 }
 0x232   :  { %v3795_v35 = vpop.f32.mrb[5].mxu0 }
 0x235   :  { %v630_v36 = vpop.f32.mrb[6].mxu0 }
 0x236   :  { %v3805_v37 = vpop.f32.mrb[7].mxu0  ;;  %v631_v51 = vadd.f32 %v630_v36, %v4456_v47 }
 0x239   :  { %v780_v38 = vpop.f32.mrb[8].mxu0 }
 0x23a   :  { %v3815_v39 = vpop.f32.mrb[9].mxu0 }
 0x2a4   :  { %v392_v40 = vpop.f32.mrb[2].mxu1 }
 0x2a5   :  { %v466_v41 = vadd.f32 %v465_v34, %v392_v40  ;;  %v3790_v42 = vpop.f32.mrb[3].mxu1 }
 0x2a6   :  { %v1174_v42 = vld [vmem:[%s4807_s11 + $0x8] sm:$0xff] }
 0x2a8   :  { %v541_v43 = vpop.f32.mrb[4].mxu1 }
 0x2a9   :  { %v545_v44 = vadd.f32 %v541_v43, %v466_v41  ;;  %v3800_v45 = vpop.f32.mrb[5].mxu1  ;;  %v1173_v41 = vld [vmem:[%s4807_s11] sm:$0xff] }
 0x2ab   :  { %v551_v48 = vadd.f32 %v4454_v46, %v545_v44 }
 0x2ac   :  { %v708_v49 = vpop.f32.mrb[6].mxu1 }
 0x2ad   :  { %v552_v50 = vmax.f32 %v551_v48, 0.0  ;;  %v781_v52 = vadd.f32 %v780_v38, %v708_v49  ;;  %v3810_v53 = vpop.f32.mrb[7].mxu1 }
 0x2af   :  { %v634_v54 = vadd.f32 %v631_v51, %v552_v50  ;;  %v4571_v51 = vld [vmem:[%s4806_s9 + $0x18] sm:$0xff] }
 0x2b0   :  { %v854_v55 = vpop.f32.mrb[8].mxu1 }
 0x2b1   :  { %v635_v56 = vmax.f32 %v634_v54, 0.0  ;;  %v858_v57 = vadd.f32 %v854_v55, %v781_v52  ;;  %v3820_v58 = vpop.f32.mrb[9].mxu1  ;;  %v4578_v52 = vld [vmem:[%s4806_s9] sm:$0xff]  ;;  %v4589_v54 = vld [vmem:[%s4806_s9 + $0x8] sm:$0xff] }
 0x2b2   :  { %v4594_v55 = vld [vmem:[%s4806_s9 + $0x20] sm:$0xff] }
 0x2b3   :  { %v859_v59 = vadd.f32 %v858_v57, %v4373_v16  ;;  %v1177_v60 = vsel %vm75_vm0, %v635_v56, 0.0  ;;  %v4603_v57 = vld [vmem:[%s4806_s9 + $0x28] sm:$0xff] }
 0x2b4   :  { %1179 = vrot.lane.b32.xlu0 %v1177_v60, %s4219_s3 }
 0x2b5   :  { %v860_v61 = vmax.f32 %v859_v59, 0.0 }
 0x2b7   :  { %3827 = vmatpush3.msk.msra.mxu1 %vm75_vm0, %v860_v61  ;;  %v861_v63 = vsel %vm75_vm0, %v860_v61, 0.0 }
 0x2b8   :  { %1432 = vperm.xlu0 %4144, %v1163_v62   ;;  %3829 = vmatmul.mubr.msk.f32.vlgmr.msra.gmra.mrb[10].mxu1 %vm322_vm4, %v4384_v22 }
 0x2b9   :  { %863 = vrot.lane.b32.xlu1 %v861_v63, %s4217_s25  ;;  %3836 = vmatprep.subr.mxu1 %v4215_v1 }
 0x2ba   :  { %3837 = vmatpush3.msk.msra.mxu1 %vm84_vm1, %v4379_v21  ;;  %3838 = vmatprep.mubr.msk.f32.mxu1 %vm4216_vm3, %v4215_v1 }
 0x2bc   :  { %3839 = vmatmul.mubr.msk.f32.vlgmr.msra.gmra.mrb[12].mxu1 %vm80_vm2, %v4401_v25 }
 0x2bd   :  { %1006 = vrot.lane.b32.xlu1 %v861_v63, %s4219_s3  ;;  %3860 = vmatprep.mubr.msk.f32.mxu1 %vm75_vm0, %v1167_v33 }
 0x2c1   :  { %1344 = vrot.lane.b32.xlu1 %v1177_v60, %s4220_s30 }
 0x2c5   :  { %1437 = vperm.xlu1 %4143, %v1164_v0  }
 0x326   :  { %v1180_v5 = vpop.permute.xlu0 %1179 }
 0x32b   :  { %v864_v2 = vpop.permute.xlu1 %863 }
 0x32c   :  { %3822 = vmatpush3.msra.mxu0 %v864_v2 }
 0x32d   :  { %3824 = vmatmul.mubr.msk.f32.vlgmr.msra.gmra.mrb[10].mxu0 %vm322_vm4, %v4425_v28  ;;  %3831 = vmatprep.subr.mxu0 %v4215_v1 }
 0x32e   :  { %3833 = vmatprep.mubr.msk.f32.mxu0 %vm4216_vm3, %v4215_v1 }
 0x32f   :  { %v1007_v3 = vpop.permute.xlu1 %1006 }
 0x330   :  { %3832 = vmatpush3.msra.mxu0 %v1007_v3 }
 0x331   :  { %3834 = vmatmul.mubr.msk.f32.vlgmr.msra.gmra.mrb[12].mxu0 %vm322_vm4, %v4435_v31  ;;  %3841 = vmatprep.subr.mxu0 %v1180_v5 }
 0x332   :  { %3842 = vmatpush3.msra.mxu0 %v1180_v5  ;;  %3843 = vmatprep.mubr.msk.f32.mxu0 %vm322_vm4, %v4491_v4 }
 0x333   :  { %3846 = vmatprep.subr.msk.mxu0 %vm75_vm0, %v635_v56  ;;  %v1345_v8 = vpop.permute.xlu1 %1344 }
 0x335   :  { %3844 = vmatmul.mubr.msk.f32.vlgmr.msra.gmra.mrb[14].mxu0 %vm322_vm4, %v4500_v6 }
 0x336   :  { %3847 = vmatpush3.msk.msra.mxu0 %vm75_vm0, %v635_v56  ;;  %3848 = vmatprep.mubr.msk.f32.mxu0 %vm322_vm4, %v4506_v7 }
 0x337   :  { %3851 = vmatprep.subr.mxu0 %v1345_v8  ;;  %v4538_v28 = vpop.permute.xlu0 %1432 }
 0x33d   :  { %3849 = vmatmul.mubr.msk.f32.vlgmr.msra.gmra.mrb[14].mxu0 %vm322_vm4, %v4516_v9 }
 0x33e   :  { %3852 = vmatpush3.msra.mxu0 %v1345_v8  ;;  %3853 = vmatprep.mubr.msk.f32.mxu0 %vm322_vm4, %v4521_v10  ;;  %v1172_v8 = vld [vmem:[%s4808_s10 + $0x8] sm:$0xff] }
 0x33f   :  { %3877 = vmatprep.subr.mxu0 %v635_v56 }
 0x344   :  { %v4536_v26 = vpop.permute.xlu1 %1437 }
 0x345   :  { %3854 = vmatmul.mubr.msk.f32.vlgmr.msra.gmra.mrb[14].mxu0 %vm322_vm4, %v4530_v11 }
 0x346   :  { %3878 = vmatpush3.msra.mxu0 %v635_v56  ;;  %3879 = vmatprep.mubr.msk.f32.mxu0 %vm322_vm4, %v1173_v41 }
 0x349   :  { %3880 = vmatmul.mubr.msk.f32.vlgmr.msra.gmra.mrb[16].mxu0 %vm322_vm4, %v1174_v42 }
 0x34a   :  { %3901 = vmatprep.mubr.msk.f32.mxu0 %vm75_vm0, %v1167_v33 }
 0x38b   :  { %v1002_v12 = vpop.f32.mrb[10].mxu1 }
 0x38c   :  { %v3830_v13 = vpop.f32.mrb[11].mxu1 }
 0x38f   :  { %v1151_v14 = vpop.f32.mrb[12].mxu1 }
 0x390   :  { %v3840_v15 = vpop.f32.mrb[13].mxu1  ;;  %v1152_v23 = vadd.f32 %v1151_v14, %v4456_v47 }
 0x400   :  { %v932_v16 = vpop.f32.mrb[10].mxu0 }
 0x401   :  { %v1003_v17 = vadd.f32 %v1002_v12, %v932_v16  ;;  %v3825_v18 = vpop.f32.mrb[11].mxu0 }
 0x404   :  { %v1075_v19 = vpop.f32.mrb[12].mxu0 }
 0x405   :  { %v1079_v20 = vadd.f32 %v1075_v19, %v1003_v17  ;;  %v3835_v21 = vpop.f32.mrb[13].mxu0 }
 0x407   :  { %v1080_v22 = vadd.f32 %v1079_v20, %v4454_v46 }
 0x409   :  { %v1081_v24 = vmax.f32 %v1080_v22, 0.0 }
 0x40b   :  { %v1155_v25 = vadd.f32 %v1152_v23, %v1081_v24 }
 0x40d   :  { %v1156_v39 = vmax.f32 %v1155_v25, 0.0 }
 0x40f   :  { %v1814_v40 = vsel %vm75_vm0, %v1156_v39, 0.0 }
 0x418   :  { %v3855_v27 = vpop.f32.mrb[14].mxu0 }
 0x419   :  { %v1441_v29 = vadd.f32 %v3855_v27, %v4536_v26  ;;  %v1419_v30 = vpop.f32.mrb[15].mxu0 }
 0x41a   :  { %v1440_v31 = vadd.f32 %v4538_v28, %v1419_v30 }
 0x41b   :  { %v1443_v32 = vmax.f32 %v1441_v29, 0.0 }
 0x41c   :  { %v1442_v34 = vmax.f32 %v1440_v31, 0.0  ;;  %v3881_v12 = vpop.f32.mrb[16].mxu0 }
 0x41d   :  { %v1445_v35 = vsel %vm75_vm0, %v1443_v32, 0.0  ;;  %v1801_v14 = vpop.f32.mrb[17].mxu0 }
 0x41e   :  { %v1444_v36 = vsel %vm75_vm0, %v1442_v34, 0.0  ;;  %v4018_v37 = vpack.c.bf16 %v1443_v32, %v1442_v34 }
 0x41f   :  { %v4150_v38 = vpack.i.bf16 %v1445_v35, %v1444_v36  ;;  %v2381_v36 = vld [vmem:[%s4810_s13 + $0x10] sm:$0xff] }
 0x421   :  { %4151 = vrot.lane.b32.xlu1 %v4150_v38, %s4220_s30  ;;  %4146 = vrot.lane.b32.xlu0 %v4150_v38, %s4219_s3 }
 0x425   :  { %1969 = vrot.lane.b32.xlu1 %v1814_v40, %s4220_s30  ;;  %1816 = vrot.lane.b32.xlu0 %v1814_v40, %s4219_s3 }
 0x493   :  { %v4147_v43 = vpop.permute.xlu0 %4146  ;;  %v4152_v46 = vpop.permute.xlu1 %4151 }
 0x494   :  { %v4149_v44 = vunpack.i.h.bf16 %v4147_v43  ;;  %v4148_v45 = vunpack.i.l.bf16 %v4147_v43  ;;  %v4154_v49 = vunpack.i.h.bf16 %v4152_v46  ;;  %v4153_v50 = vunpack.i.l.bf16 %v4152_v46 }
 0x496   :  { %v4014_v47 = vpack.c.bf16 %v4149_v44, %v4148_v45  ;;  %v4024_v53 = vpack.c.bf16 %v4154_v49, %v4153_v50 }
 0x497   :  { %v1817_v56 = vpop.permute.xlu0 %1816  ;;  %v1970_v58 = vpop.permute.xlu1 %1969 }
 0x498   :  { %4015 = vmatprep.subr.bf16.mxu1 %v4014_v47 }
 0x499   :  { %4017 = vmatpush3.bf16.msra.mxu1 %v4014_v47 }
 0x49a   :  { %4020 = vmatprep.subr.msk.bf16.mxu1 %vm4564_vm5, %v4018_v37 }
 0x49c   :  { %3861 = vmatmul.mubr.msk.f32.vlgmr.msra.gmra.mrb[14].mxu1 %vm75_vm0, %v4571_v51 }
 0x49d   :  { %4023 = vmatpush3.bf16.msk.msra.mxu1 %vm4564_vm5, %v4018_v37  ;;  %3867 = vmatprep.mubr.msk.f32.mxu1 %vm75_vm0, %v4578_v52 }
 0x49e   :  { %4025 = vmatprep.subr.bf16.mxu1 %v4024_v53 }
 0x4a4   :  { %3868 = vmatmul.mubr.msk.f32.vlgmr.msra.gmra.mrb[14].mxu1 %vm75_vm0, %v4589_v54 }
 0x4a5   :  { %4027 = vmatpush3.bf16.msra.mxu1 %v4024_v53  ;;  %3874 = vmatprep.mubr.msk.f32.mxu1 %vm75_vm0, %v4594_v55 }
 0x4a6   :  { %3882 = vmatprep.subr.mxu1 %v1817_v56 }
 0x4ac   :  { %3875 = vmatmul.mubr.msk.f32.vlgmr.msra.gmra.mrb[14].mxu1 %vm75_vm0, %v4603_v57 }
 0x4ad   :  { %3883 = vmatpush3.msra.mxu1 %v1817_v56  ;;  %3884 = vmatprep.mubr.msk.f32.mxu1 %vm322_vm4, %v4491_v4  ;;  %v2384_v56 = vld [vmem:[%s4810_s13 + $0x28] sm:$0xff] }
 0x4ae   :  { %3887 = vmatprep.subr.msk.mxu1 %vm75_vm0, %v1156_v39 }
 0x4b0   :  { %3885 = vmatmul.mubr.msk.f32.vlgmr.msra.gmra.mrb[16].mxu1 %vm322_vm4, %v4500_v6 }
 0x4b1   :  { %3888 = vmatpush3.msk.msra.mxu1 %vm75_vm0, %v1156_v39  ;;  %3889 = vmatprep.mubr.msk.f32.mxu1 %vm322_vm4, %v4506_v7 }
 0x4b2   :  { %3892 = vmatprep.subr.mxu1 %v1970_v58 }
 0x4b8   :  { %3890 = vmatmul.mubr.msk.f32.vlgmr.msra.gmra.mrb[16].mxu1 %vm322_vm4, %v4516_v9  ;;  %v1171_v9 = vld [vmem:[%s4808_s10] sm:$0xff] }
 0x4b9   :  { %3893 = vmatpush3.msra.mxu1 %v1970_v58  ;;  %3894 = vmatprep.mubr.msk.f32.mxu1 %vm322_vm4, %v4521_v10  ;;  %v1176_v10 = vld [vmem:[%s4809_s12 + $0x8] sm:$0xff] }
 0x4ba   :  { %3918 = vmatprep.subr.mxu1 %v1156_v39 }
 0x4c0   :  { %3895 = vmatmul.mubr.msk.f32.vlgmr.msra.gmra.mrb[16].mxu1 %vm322_vm4, %v4530_v11  ;;  %v1175_v11 = vld [vmem:[%s4809_s12] sm:$0xff] }
 0x4c1   :  { %3919 = vmatpush3.msra.mxu1 %v1156_v39  ;;  %3920 = vmatprep.mubr.msk.f32.mxu1 %vm322_vm4, %v1173_v41 }
 0x4c4   :  { %3921 = vmatmul.mubr.msk.f32.vlgmr.msra.gmra.mrb[18].mxu1 %vm322_vm4, %v1174_v42 }
 0x57f   :  { %v3876_v59 = vpop.f32.mrb[14].mxu1 }
 0x580   :  { %v1694_v60 = vpop.f32.mrb[15].mxu1 }
 0x593   :  { %v3896_v61 = vpop.f32.mrb[16].mxu1 }
 0x594   :  { %v2050_v62 = vadd.f32 %v3896_v61, %v4536_v26  ;;  %v2038_v63 = vpop.f32.mrb[17].mxu1 }
 0x595   :  { %v2049_v0 = vadd.f32 %v2038_v63, %v4538_v28 }
 0x596   :  { %v2052_v2 = vmax.f32 %v2050_v62, 0.0 }
 0x597   :  { %v2051_v3 = vmax.f32 %v2049_v0, 0.0  ;;  %v4641_v13 = vpop.f32.mrb[18].mxu1 }
 0x598   :  { %v2054_v4 = vsel %vm75_vm0, %v2052_v2, 0.0  ;;  %v4643_v15 = vpop.f32.mrb[19].mxu1 }
 0x599   :  { %v2053_v5 = vsel %vm75_vm0, %v2051_v3, 0.0  ;;  %v4032_v6 = vpack.c.bf16 %v2052_v2, %v2051_v3 }
 0x59a   :  { %v4160_v7 = vpack.i.bf16 %v2054_v4, %v2053_v5 }
 0x59c   :  { %4161 = vrot.lane.b32.xlu1 %v4160_v7, %s4220_s30  ;;  %4156 = vrot.lane.b32.xlu0 %v4160_v7, %s4219_s3  ;;  %s4221_s3 = smov 120  }
 0x5a0   :  { %1712 = vperm.xlu1 %4143, %v1172_v8   ;;  %1707 = vperm.xlu0 %4144, %v1171_v9   ;;  %v2386_v9 = vld [vmem:[%s4811_s14 + $0x8] sm:$0xff] }
 0x5a4   :  { %1726 = vperm.xlu1 %4143, %v1176_v10   ;;  %1721 = vperm.xlu0 %4144, %v1175_v11   ;;  %v2385_v10 = vld [vmem:[%s4811_s14] sm:$0xff] }
 0x60e   :  { %v4157_v16 = vpop.permute.xlu0 %4156  ;;  %v4162_v19 = vpop.permute.xlu1 %4161 }
 0x60f   :  { %v4159_v17 = vunpack.i.h.bf16 %v4157_v16  ;;  %v4158_v18 = vunpack.i.l.bf16 %v4157_v16  ;;  %v4164_v21 = vunpack.i.h.bf16 %v4162_v19  ;;  %v4163_v22 = vunpack.i.l.bf16 %v4162_v19 }
 0x611   :  { %v4028_v20 = vpack.c.bf16 %v4159_v17, %v4158_v18  ;;  %v4038_v23 = vpack.c.bf16 %v4164_v21, %v4163_v22 }
 0x613   :  { %4029 = vmatprep.subr.bf16.mxu0 %v4028_v20 }
 0x614   :  { %4031 = vmatpush3.bf16.msra.mxu0 %v4028_v20 }
 0x615   :  { %4034 = vmatprep.subr.msk.bf16.mxu0 %vm4564_vm5, %v4032_v6 }
 0x617   :  { %3902 = vmatmul.mubr.msk.f32.vlgmr.msra.gmra.mrb[18].mxu0 %vm75_vm0, %v4571_v51  ;;  %v2382_v51 = vld [vmem:[%s4810_s13 + $0x18] sm:$0xff] }
 0x618   :  { %4037 = vmatpush3.bf16.msk.msra.mxu0 %vm4564_vm5, %v4032_v6  ;;  %3908 = vmatprep.mubr.msk.f32.mxu0 %vm75_vm0, %v4578_v52  ;;  %v2379_v52 = vld [vmem:[%s4810_s13] sm:$0xff] }
 0x619   :  { %4039 = vmatprep.subr.bf16.mxu0 %v4038_v23 }
 0x61f   :  { %v1713_v24 = vpop.permute.xlu1 %1712  ;;  %v1708_v25 = vpop.permute.xlu0 %1707  ;;  %3909 = vmatmul.mubr.msk.f32.vlgmr.msra.gmra.mrb[18].mxu0 %vm75_vm0, %v4589_v54  ;;  %v2380_v54 = vld [vmem:[%s4810_s13 + $0x8] sm:$0xff] }
 0x620   :  { %v1716_v26 = vadd.f32 %v3876_v59, %v1713_v24  ;;  %v1715_v27 = vadd.f32 %v1708_v25, %v1694_v60  ;;  %4041 = vmatpush3.bf16.msra.mxu0 %v4038_v23  ;;  %3915 = vmatprep.mubr.msk.f32.mxu0 %vm75_vm0, %v4594_v55  ;;  %v2383_v55 = vld [vmem:[%s4810_s13 + $0x20] sm:$0xff] }
 0x622   :  { %v1718_v30 = vmax.f32 %v1716_v26, 0.0  ;;  %v1717_v31 = vmax.f32 %v1715_v27, 0.0  ;;  %v2389_v27 = vld [vmem:[%s4812_s15 + $0x10] sm:$0xff] }
 0x623   :  { %v1727_v28 = vpop.permute.xlu1 %1726  ;;  %v1722_v29 = vpop.permute.xlu0 %1721  ;;  %3948 = vmatprep.mubr.msk.f32.mxu1 %vm75_vm0, %v2389_v27 }
 0x624   :  { %v1807_v32 = vadd.f32 %v3881_v12, %v1727_v28  ;;  %v1802_v33 = vadd.f32 %v1801_v14, %v1722_v29  ;;  %v2372_v61 = vadd.f32 %v4641_v13, %v1727_v28  ;;  %v2367_v63 = vadd.f32 %v4643_v15, %v1722_v29 }
 0x626   :  { %v1811_v34 = vadd.f32 %v1807_v32, %v1718_v30  ;;  %v1810_v35 = vadd.f32 %v1802_v33, %v1717_v31 }
 0x627   :  { %3916 = vmatmul.mubr.msk.f32.vlgmr.msra.gmra.mrb[18].mxu0 %vm75_vm0, %v4603_v57 }
 0x628   :  { %v4662_v37 = vmax.f32 %v1811_v34, 0.0  ;;  %v4664_v38 = vmax.f32 %v1810_v35, 0.0  ;;  %3927 = vmatprep.mubr.msk.f32.mxu0 %vm75_vm0, %v2381_v36 }
 0x62a   :  { %v2395_v39 = vsel %vm75_vm0, %v4664_v38, 0.0  ;;  %v2396_v40 = vsel %vm75_vm0, %v4662_v37, 0.0  ;;  %v4046_v50 = vpack.c.bf16 %v4662_v37, %v4664_v38 }
 0x62b   :  { %v4170_v41 = vpack.i.bf16 %v2396_v40, %v2395_v39 }
 0x62d   :  { %4171 = vrot.lane.b32.xlu1 %v4170_v41, %s4221_s3  ;;  %4166 = vrot.lane.b32.xlu0 %v4170_v41, %s4220_s30 }
 0x69f   :  { %v4167_v42 = vpop.permute.xlu0 %4166  ;;  %v4172_v45 = vpop.permute.xlu1 %4171 }
 0x6a0   :  { %v4169_v43 = vunpack.i.h.bf16 %v4167_v42  ;;  %v4168_v44 = vunpack.i.l.bf16 %v4167_v42  ;;  %v4174_v47 = vunpack.i.h.bf16 %v4172_v45  ;;  %v4173_v49 = vunpack.i.l.bf16 %v4172_v45  ;;  %v2390_v42 = vld [vmem:[%s4812_s15 + $0x18] sm:$0xff]  ;;  %v2391_v45 = vld [vmem:[%s4812_s15 + $0x20] sm:$0xff] }
 0x6a2   :  { %v4042_v46 = vpack.c.bf16 %v4169_v43, %v4168_v44  ;;  %v4052_v53 = vpack.c.bf16 %v4174_v47, %v4173_v49  ;;  %v2388_v44 = vld [vmem:[%s4812_s15 + $0x8] sm:$0xff] }
 0x6a4   :  { %4043 = vmatprep.subr.bf16.mxu0 %v4042_v46 }
 0x6a5   :  { %4045 = vmatpush3.bf16.msra.mxu0 %v4042_v46  ;;  %v2392_v46 = vld [vmem:[%s4812_s15 + $0x28] sm:$0xff] }
 0x6a6   :  { %4048 = vmatprep.subr.msk.bf16.mxu0 %vm4564_vm5, %v4046_v50 }
 0x6a8   :  { %3928 = vmatmul.mubr.msk.f32.vlgmr.msra.gmra.mrb[20].mxu0 %vm75_vm0, %v2382_v51 }
 0x6a9   :  { %4051 = vmatpush3.bf16.msk.msra.mxu0 %vm4564_vm5, %v4046_v50  ;;  %3934 = vmatprep.mubr.msk.f32.mxu0 %vm75_vm0, %v2379_v52 }
 0x6aa   :  { %4053 = vmatprep.subr.bf16.mxu0 %v4052_v53 }
 0x6b0   :  { %3935 = vmatmul.mubr.msk.f32.vlgmr.msra.gmra.mrb[20].mxu0 %vm75_vm0, %v2380_v54 }
 0x6b1   :  { %4055 = vmatpush3.bf16.msra.mxu0 %v4052_v53  ;;  %3941 = vmatprep.mubr.msk.f32.mxu0 %vm75_vm0, %v2383_v55 }
 0x6b8   :  { %3942 = vmatmul.mubr.msk.f32.vlgmr.msra.gmra.mrb[20].mxu0 %vm75_vm0, %v2384_v56 }
 0x6b9   :  { %3969 = vmatprep.mubr.msk.f32.mxu0 %vm75_vm0, %v2381_v36 }
 0x6fa   :  { %v3917_v57 = vpop.f32.mrb[18].mxu0 }
 0x6fb   :  { %v2297_v58 = vadd.f32 %v3917_v57, %v1713_v24  ;;  %v2285_v59 = vpop.f32.mrb[19].mxu0 }
 0x6fc   :  { %v2296_v60 = vadd.f32 %v2285_v59, %v1708_v25  ;;  %v2393_v59 = vld [vmem:[%s4813_s16] sm:$0xff] }
 0x6fd   :  { %v2299_v62 = vmax.f32 %v2297_v58, 0.0  ;;  %v2394_v58 = vld [vmem:[%s4813_s16 + $0x8] sm:$0xff]  ;;  %s4222_s16 = smov 113  }
 0x6fe   :  { %v2298_v0 = vmax.f32 %v2296_v60, 0.0 }
 0x6ff   :  { %v2376_v2 = vadd.f32 %v2372_v61, %v2299_v62 }
 0x700   :  { %v2375_v3 = vadd.f32 %v2367_v63, %v2298_v0 }
 0x701   :  { %v4702_v4 = vmax.f32 %v2376_v2, 0.0 }
 0x702   :  { %v4704_v5 = vmax.f32 %v2375_v3, 0.0 }
 0x703   :  { %v2950_v6 = vsel %vm75_vm0, %v4702_v4, 0.0 }
 0x704   :  { %v2949_v7 = vsel %vm75_vm0, %v4704_v5, 0.0  ;;  %v4074_v18 = vpack.c.bf16 %v4702_v4, %v4704_v5 }
 0x705   :  { %v4180_v8 = vpack.i.bf16 %v2950_v6, %v2949_v7 }
 0x707   :  { %4181 = vrot.lane.b32.xlu1 %v4180_v8, %s4221_s3  ;;  %4176 = vrot.lane.b32.xlu0 %v4180_v8, %s4220_s30 }
 0x70b   :  { %2663 = vperm.xlu1 %4143, %v2386_v9   ;;  %2658 = vperm.xlu0 %4144, %v2385_v10  }
 0x779   :  { %v4177_v11 = vpop.permute.xlu0 %4176  ;;  %v4182_v14 = vpop.permute.xlu1 %4181 }
 0x77a   :  { %v4179_v12 = vunpack.i.h.bf16 %v4177_v11  ;;  %v4178_v13 = vunpack.i.l.bf16 %v4177_v11  ;;  %v4184_v16 = vunpack.i.h.bf16 %v4182_v14  ;;  %v4183_v17 = vunpack.i.l.bf16 %v4182_v14 }
 0x77c   :  { %v4070_v15 = vpack.c.bf16 %v4179_v12, %v4178_v13  ;;  %v4080_v19 = vpack.c.bf16 %v4184_v16, %v4183_v17 }
 0x77e   :  { %4071 = vmatprep.subr.bf16.mxu0 %v4070_v15 }
 0x77f   :  { %4073 = vmatpush3.bf16.msra.mxu0 %v4070_v15 }
 0x780   :  { %4076 = vmatprep.subr.msk.bf16.mxu0 %vm4564_vm5, %v4074_v18 }
 0x782   :  { %3970 = vmatmul.mubr.msk.f32.vlgmr.msra.gmra.mrb[22].mxu0 %vm75_vm0, %v2382_v51 }
 0x783   :  { %4079 = vmatpush3.bf16.msk.msra.mxu0 %vm4564_vm5, %v4074_v18  ;;  %3976 = vmatprep.mubr.msk.f32.mxu0 %vm75_vm0, %v2379_v52 }
 0x784   :  { %4081 = vmatprep.subr.bf16.mxu0 %v4080_v19 }
 0x78a   :  { %v2664_v20 = vpop.permute.xlu1 %2663  ;;  %3977 = vmatmul.mubr.msk.f32.vlgmr.msra.gmra.mrb[22].mxu0 %vm75_vm0, %v2380_v54  ;;  %v2659_v22 = vpop.permute.xlu0 %2658 }
 0x78b   :  { %4083 = vmatpush3.bf16.msra.mxu0 %v4080_v19  ;;  %v3943_v21 = vpop.f32.mrb[20].mxu0  ;;  %3983 = vmatprep.mubr.msk.f32.mxu0 %vm75_vm0, %v2383_v55  ;;  %v3448_v19 = vld [vmem:[%s4814_s18] sm:$0x3] }
 0x78c   :  { %v2667_v23 = vadd.f32 %v3943_v21, %v2664_v20  ;;  %v2645_v24 = vpop.f32.mrb[21].mxu0 }
 0x78d   :  { %v2666_v25 = vadd.f32 %v2659_v22, %v2645_v24 }
 0x78e   :  { %v2669_v26 = vmax.f32 %v2667_v23, 0.0 }
 0x78f   :  { %v2668_v28 = vmax.f32 %v2666_v25, 0.0 }
 0x790   :  { %v2671_v29 = vsel %vm75_vm0, %v2669_v26, 0.0 }
 0x791   :  { %v2670_v30 = vsel %vm75_vm0, %v2668_v28, 0.0  ;;  %v4060_v31 = vpack.c.bf16 %v2669_v26, %v2668_v28 }
 0x792   :  { %3984 = vmatmul.mubr.msk.f32.vlgmr.msra.gmra.mrb[22].mxu0 %vm75_vm0, %v2384_v56  ;;  %v4190_v32 = vpack.i.bf16 %v2671_v29, %v2670_v30 }
 0x793   :  { %4011 = vmatprep.mubr.msk.f32.mxu0 %vm4216_vm3, %v4215_v1  ;;  %v2387_v1 = vld [vmem:[%s4812_s15] sm:$0xff] }
 0x794   :  { %4191 = vrot.lane.b32.xlu1 %v4190_v32, %s4221_s3  ;;  %4186 = vrot.lane.b32.xlu0 %v4190_v32, %s4220_s30 }
 0x806   :  { %v4187_v33 = vpop.permute.xlu0 %4186  ;;  %v4192_v36 = vpop.permute.xlu1 %4191 }
 0x807   :  { %v4189_v34 = vunpack.i.h.bf16 %v4187_v33  ;;  %v4188_v35 = vunpack.i.l.bf16 %v4187_v33  ;;  %v4194_v40 = vunpack.i.h.bf16 %v4192_v36  ;;  %v4193_v41 = vunpack.i.l.bf16 %v4192_v36 }
 0x809   :  { %v4056_v39 = vpack.c.bf16 %v4189_v34, %v4188_v35  ;;  %v4066_v43 = vpack.c.bf16 %v4194_v40, %v4193_v41 }
 0x80b   :  { %4057 = vmatprep.subr.bf16.mxu1 %v4056_v39 }
 0x80c   :  { %4059 = vmatpush3.bf16.msra.mxu1 %v4056_v39 }
 0x80d   :  { %4062 = vmatprep.subr.msk.bf16.mxu1 %vm4564_vm5, %v4060_v31 }
 0x80f   :  { %3949 = vmatmul.mubr.msk.f32.vlgmr.msra.gmra.mrb[20].mxu1 %vm75_vm0, %v2390_v42 }
 0x810   :  { %4065 = vmatpush3.bf16.msk.msra.mxu1 %vm4564_vm5, %v4060_v31  ;;  %3955 = vmatprep.mubr.msk.f32.mxu1 %vm75_vm0, %v2387_v1 }
 0x811   :  { %4067 = vmatprep.subr.bf16.mxu1 %v4066_v43 }
 0x817   :  { %3956 = vmatmul.mubr.msk.f32.vlgmr.msra.gmra.mrb[20].mxu1 %vm75_vm0, %v2388_v44 }
 0x818   :  { %4069 = vmatpush3.bf16.msra.mxu1 %v4066_v43  ;;  %3962 = vmatprep.mubr.msk.f32.mxu1 %vm75_vm0, %v2391_v45 }
 0x81f   :  { %3963 = vmatmul.mubr.msk.f32.vlgmr.msra.gmra.mrb[20].mxu1 %vm75_vm0, %v2392_v46 }
 0x820   :  { %3990 = vmatprep.mubr.msk.f32.mxu1 %vm75_vm0, %v2389_v27 }
 0x865   :  { %v3985_v47 = vpop.f32.mrb[22].mxu0 }
 0x866   :  { %v3193_v49 = vadd.f32 %v3985_v47, %v2664_v20  ;;  %v3181_v50 = vpop.f32.mrb[23].mxu0 }
 0x867   :  { %v3192_v51 = vadd.f32 %v3181_v50, %v2659_v22 }
 0x868   :  { %v3195_v52 = vmax.f32 %v3193_v49, 0.0 }
 0x869   :  { %v3194_v53 = vmax.f32 %v3192_v51, 0.0 }
 0x86a   :  { %v3197_v54 = vsel %vm75_vm0, %v3195_v52, 0.0 }
 0x86b   :  { %v3196_v55 = vsel %vm75_vm0, %v3194_v53, 0.0  ;;  %v4088_v56 = vpack.c.bf16 %v3195_v52, %v3194_v53 }
 0x86c   :  { %v4200_v57 = vpack.i.bf16 %v3197_v54, %v3196_v55 }
 0x86e   :  { %4201 = vrot.lane.b32.xlu1 %v4200_v57, %s4221_s3  ;;  %4196 = vrot.lane.b32.xlu0 %v4200_v57, %s4220_s30 }
 0x872   :  { %2938 = vperm.xlu1 %4143, %v2394_v58   ;;  %2933 = vperm.xlu0 %4144, %v2393_v59  }
 0x8e0   :  { %v4197_v60 = vpop.permute.xlu0 %4196  ;;  %v4202_v63 = vpop.permute.xlu1 %4201 }
 0x8e1   :  { %v4199_v61 = vunpack.i.h.bf16 %v4197_v60  ;;  %v4198_v62 = vunpack.i.l.bf16 %v4197_v60  ;;  %v4204_v2 = vunpack.i.h.bf16 %v4202_v63  ;;  %v4203_v3 = vunpack.i.l.bf16 %v4202_v63 }
 0x8e3   :  { %v4084_v0 = vpack.c.bf16 %v4199_v61, %v4198_v62  ;;  %v4094_v6 = vpack.c.bf16 %v4204_v2, %v4203_v3 }
 0x8e5   :  { %4085 = vmatprep.subr.bf16.mxu1 %v4084_v0 }
 0x8e6   :  { %4087 = vmatpush3.bf16.msra.mxu1 %v4084_v0 }
 0x8e7   :  { %4090 = vmatprep.subr.msk.bf16.mxu1 %vm4564_vm5, %v4088_v56 }
 0x8e9   :  { %3991 = vmatmul.mubr.msk.f32.vlgmr.msra.gmra.mrb[22].mxu1 %vm75_vm0, %v2390_v42 }
 0x8ea   :  { %4093 = vmatpush3.bf16.msk.msra.mxu1 %vm4564_vm5, %v4088_v56  ;;  %3997 = vmatprep.mubr.msk.f32.mxu1 %vm75_vm0, %v2387_v1 }
 0x8eb   :  { %4095 = vmatprep.subr.bf16.mxu1 %v4094_v6 }
 0x8f1   :  { %v2939_v7 = vpop.permute.xlu1 %2938  ;;  %3998 = vmatmul.mubr.msk.f32.vlgmr.msra.gmra.mrb[22].mxu1 %vm75_vm0, %v2388_v44  ;;  %v2934_v9 = vpop.permute.xlu0 %2933 }
 0x8f2   :  { %4097 = vmatpush3.bf16.msra.mxu1 %v4094_v6  ;;  %v3964_v8 = vpop.f32.mrb[20].mxu1  ;;  %4004 = vmatprep.mubr.msk.f32.mxu1 %vm75_vm0, %v2391_v45 }
 0x8f3   :  { %v2942_v10 = vadd.f32 %v3964_v8, %v2939_v7  ;;  %v2920_v11 = vpop.f32.mrb[21].mxu1 }
 0x8f4   :  { %v2941_v12 = vadd.f32 %v2934_v9, %v2920_v11 }
 0x8f5   :  { %v2944_v13 = vmax.f32 %v2942_v10, 0.0 }
 0x8f6   :  { %v2943_v14 = vmax.f32 %v2941_v12, 0.0 }
 0x8f7   :  { %v2946_v15 = vadd.f32 %v2944_v13, %v4662_v37  ;;  %v4223_v37 = vmov 0.0|0.0  }
 0x8f8   :  { %v2945_v48 = vadd.f32 %v2943_v14, %v4664_v38  ;;  %4098 = vmatprep.subr.bf16.mxu0 %v4223_v37 }
 0x8f9   :  { %v2948_v16 = vmax.f32 %v2946_v15, 0.0  ;;  %4005 = vmatmul.mubr.msk.f32.vlgmr.msra.gmra.mrb[22].mxu1 %vm75_vm0, %v2392_v46 }
 0x8fa   :  { %v2947_v17 = vmax.f32 %v2945_v48, 0.0 }
 0x8fc   :  { %v4205_v18 = vpack.i.bf16 %v2948_v16, %v2947_v17 }
 0x8fe   :  { %4206 = vrot.lane.b32.xlu0 %v4205_v18, %s4222_s16 }
 0x902   :  { %3470 = vperm.xlu0 %4144, %v3448_v19  }
 0x970   :  { %v4207_v30 = vpop.permute.xlu0 %4206 }
 0x971   :  { %v4209_v32 = vunpack.i.h.bf16 %v4207_v30  ;;  %v4208_v33 = vunpack.i.l.bf16 %v4207_v30 }
 0x9cc   :  { %v4006_v20 = vpop.f32.mrb[22].mxu1 }
 0x9cd   :  { %v3440_v21 = vadd.f32 %v4006_v20, %v2939_v7  ;;  %v3428_v22 = vpop.f32.mrb[23].mxu1 }
 0x9ce   :  { %v3439_v23 = vadd.f32 %v3428_v22, %v2934_v9 }
 0x9cf   :  { %v3442_v24 = vmax.f32 %v3440_v21, 0.0 }
 0x9d0   :  { %v3441_v38 = vmax.f32 %v3439_v23, 0.0 }
 0x9d1   :  { %v3444_v25 = vadd.f32 %v3442_v24, %v4702_v4  ;;  %v3447_v4 = vld [vmem:[%s4815_s17] sm:$0x3] }
 0x9d2   :  { %v3443_v26 = vadd.f32 %v3441_v38, %v4704_v5  ;;  %v3471_v5 = vpop.permute.xlu0 %3470 }
 0x9d3   :  { %v3446_v27 = vmax.f32 %v3444_v25, 0.0 }
 0x9d4   :  { %v3445_v28 = vmax.f32 %v3443_v26, 0.0 }
 0x9d6   :  { %v4210_v29 = vpack.i.bf16 %v3446_v27, %v3445_v28 }
 0x9d8   :  { %4211 = vrot.lane.b32.xlu1 %v4210_v29, %s4224_s8 }
 0xa4a   :  { %v4212_v31 = vpop.permute.xlu1 %4211 }
 0xa4b   :  { %v4214_v34 = vunpack.i.h.bf16 %v4212_v31  ;;  %v4213_v35 = vunpack.i.l.bf16 %v4212_v31 }
 0xa4d   :  { %v3467_v36 = vsel %vm3465_vm6, %v4209_v32, %v4214_v34  ;;  %v3466_v39 = vsel %vm3465_vm6, %v4208_v33, %v4213_v35 }
 0xa4e   :  { %v4099_v40 = vpack.c.bf16 %v3467_v36, %v3466_v39 }
 0xa50   :  { %4100 = vmatpush3.bf16.msra.mxu0 %v4099_v40 }
 0xa53   :  { %4012 = vmatmul.mubr.msk.f32.vlgmr.msra.gmra.mrb[24].mxu0 %vm75_vm0, %v3447_v4 }
 0xb26   :  { %v3542_v41 = vpop.f32.mrb[24].mxu0 }
 0xb27   :  { %v3543_v42 = vadd.f32 %v3542_v41, %v3471_v5  ;;  %v4013_v1 = vpop.f32.mrb[25].mxu0 }
 0xb29   :  { %3547 = vst.msk [vmem:[%s4816_s19] sm:$0x3] %vm3546_vm7, %v3543_v42 }

</bundles_post_ra>
